<compile_context>
chip_gen: v7x
topology: tpu7x:2x2x1
jax: 0.10.0
libtpu: 0.0.40
codegen_flags: <defaults>
</compile_context>

<pallas_src>
import math

import numpy as np

import jax
import jax.numpy as jnp
from jax.experimental import pallas as pl
from jax.experimental.pallas import tpu as pltpu


# ----------------------------------------------------------------------------
# Fused kernel: one batch row x all FPN levels (concatenated on the lane axis)
#   (hidden conv + mask + ReLU)* -> offset conv -> mask*Scale -> ReLU
# ----------------------------------------------------------------------------
def _reg_head_fused_kernel(x_ref, mask_ref, mscale_ref, pok_ref, nok_ref, *rest):
    # x_ref:      [1, Cin, T]   input features, all levels concatenated on T
    # mask_ref:   [1, 1, T]     float validity mask (hidden-layer multiply)
    # mscale_ref: [1, 1, T]     mask * per-level Scale (offset-head multiply)
    # pok_ref:    [1, T]        0 at the FIRST column of each level segment
    # nok_ref:    [1, T]        0 at the LAST  column of each level segment
    # rest:       w0,b0, w1,b1, ..., w_off,b_off, o_ref
    #             w_i: [Cout_i, 3*Cin_i] (conv taps stacked on contraction dim)
    #             b_i: [Cout_i, 1]
    # o_ref:      [1, Coff_pad, T]
    *wb_refs, o_ref = rest
    num_convs = len(wb_refs) // 2

    x = x_ref[0]                     # [Cin, T]
    mask = mask_ref[0]               # [1, T]   broadcasts over channels
    mscale = mscale_ref[0]           # [1, T]
    prev_ok = pok_ref[...]           # [1, T]
    next_ok = nok_ref[...]           # [1, T]
    t_total = x.shape[1]

    def conv3(a, w_ref, b_ref):
        # a: [C, T] -> W[Cout,3C] @ [a(t-1); a(t); a(t+1)] + b -> [Cout, T]
        # Taps built with pltpu.roll (XLU slot); wrap-around across the array
        # ends AND level-segment boundaries is zeroed by the hoisted edge
        # vectors (roll only accepts non-negative shifts: T-1 == shift -1).
        prev = pltpu.roll(a, shift=1, axis=1) * prev_ok
        nxt = pltpu.roll(a, shift=t_total - 1, axis=1) * next_ok
        stacked = jnp.concatenate([prev, a, nxt], axis=0)          # [3C, T]
        w = w_ref[...]
        y = jnp.dot(w, stacked.astype(w.dtype),
                    preferred_element_type=jnp.float32)
        return y + b_ref[...]                                      # + [Cout, 1]

    h = x
    for i in range(num_convs - 1):
        # MaskedConv1D -> Identity norm -> ReLU (mask before ReLU, as in torch)
        h = jnp.maximum(conv3(h, wb_refs[2 * i], wb_refs[2 * i + 1]) * mask, 0.0)
    # offset head -> mask -> per-level Scale -> ReLU (mask*scale fused on host)
    off = conv3(h, wb_refs[-2], wb_refs[-1]) * mscale
    o_ref[0] = jnp.maximum(off, 0.0).astype(o_ref.dtype)


# ----------------------------------------------------------------------------
# Wrappers
# ----------------------------------------------------------------------------
def _pack_conv(w_oik, b_o):
    """PyTorch conv1d weight [Cout, Cin, K] -> stacked [Cout, K*Cin]; bias -> [Cout, 1].

    Stacked column k*Cin + ci multiplies x[ci, t + k - 1], matching the
    [prev; cur; next] tap stacking done in the kernel.
    """
    cout, cin, k = w_oik.shape
    w_stacked = jnp.transpose(w_oik, (0, 2, 1)).reshape(cout, k * cin)
    return w_stacked, b_o.reshape(cout, 1)


def reg_head_forward(params, fpn_feats, fpn_masks, matmul_dtype=None):
    """fpn_feats: list of [B, C, T_l]; fpn_masks: list of [B, 1, T_l] bool.
    Returns a tuple of [B, 2*(num_bins+1), T_l] offsets (PyTorch layout).
    matmul_dtype=jnp.bfloat16 casts MXU operands (f32 accumulation kept)."""
    assert len(fpn_feats) == len(fpn_masks)
    B, cin, _ = fpn_feats[0].shape
    t_lens = [int(f.shape[2]) for f in fpn_feats]
    t_total = int(sum(t_lens))

    # --- pack weights (shared across levels); pad offset head to 8 sublanes ---
    w_off, b_off = params["offset"]
    coff = w_off.shape[0]
    coff_pad = ((coff + 7) // 8) * 8
    w_off_p = jnp.pad(w_off, ((0, coff_pad - coff), (0, 0), (0, 0)))
    b_off_p = jnp.pad(b_off, ((0, coff_pad - coff),))
    packed = [_pack_conv(w, b) for (w, b) in params["head"]]
    packed.append(_pack_conv(w_off_p, b_off_p))
    if matmul_dtype is not None:
        packed = [(w.astype(matmul_dtype), b) for (w, b) in packed]

    # --- concatenate FPN levels along T (the lane axis) ---
    x_all = jnp.concatenate(fpn_feats, axis=2)                   # [B, Cin, Ttot]
    dt = x_all.dtype
    mask_all = jnp.concatenate(fpn_masks, axis=2).astype(dt)     # [B, 1, Ttot]

    # per-column Scale vector, folded into the offset-path mask on the host
    scale_col = jnp.concatenate(
        [jnp.broadcast_to(params["scales"][l].astype(dt), (1, 1, t))
         for l, t in enumerate(t_lens)], axis=2)                 # [1, 1, Ttot]
    mask_scale = mask_all * scale_col                            # [B, 1, Ttot]

    # segment edge vectors: zero roll wrap-around on BOTH sides of each level
    starts = np.cumsum([0] + t_lens[:-1])
    ends = np.cumsum(t_lens) - 1
    col = np.arange(t_total)
    prev_ok = jnp.asarray(~np.isin(col, starts), dtype=dt).reshape(1, t_total)
    next_ok = jnp.asarray(~np.isin(col, ends), dtype=dt).reshape(1, t_total)

    wb_args, wb_specs = [], []
    for (w, b) in packed:
        wb_args += [w, b]
        wb_specs += [pl.BlockSpec(w.shape, lambda bi: (0, 0)),   # VMEM-resident
                     pl.BlockSpec(b.shape, lambda bi: (0, 0))]

    out_all = pl.pallas_call(
        _reg_head_fused_kernel,
        out_shape=jax.ShapeDtypeStruct((B, coff_pad, t_total), dt),
        grid=(B,),
        in_specs=[
            pl.BlockSpec((1, cin, t_total), lambda bi: (bi, 0, 0)),
            pl.BlockSpec((1, 1, t_total), lambda bi: (bi, 0, 0)),
            pl.BlockSpec((1, 1, t_total), lambda bi: (bi, 0, 0)),
            pl.BlockSpec((1, t_total), lambda bi: (0, 0)),
            pl.BlockSpec((1, t_total), lambda bi: (0, 0)),
        ] + wb_specs,
        out_specs=pl.BlockSpec((1, coff_pad, t_total), lambda bi: (bi, 0, 0)),
        compiler_params=pltpu.CompilerParams(
            dimension_semantics=("parallel",),
            vmem_limit_bytes=32 * 1024 * 1024,
        ),
    )(x_all, mask_all, mask_scale, prev_ok, next_ok, *wb_args)

    # strip channel padding and split back into per-level outputs
    out_all = out_all[:, :coff, :]
    out_offsets, off = (), 0
    for t in t_lens:
        out_offsets += (out_all[:, :, off:off + t],)
        off += t
    return out_offsets


def init_reg_head_params(key, input_dim, feat_dim, fpn_levels, num_layers=3,
                         kernel_size=3, num_bins=16):
    """with_ln=False -> Identity norms, all convs have bias.  Biases get small
    random values (they are learnable parameters) so the bias path is tested;
    per-level Scale values are distinct so the scale path is tested."""
    num_offsets = 2 * (num_bins + 1)
    keys = jax.random.split(key, 2 * num_layers)
    head = []
    for idx in range(num_layers - 1):
        in_dim = input_dim if idx == 0 else feat_dim
        out_dim = feat_dim
        fan_in = in_dim * kernel_size
        w = jax.random.normal(keys[2 * idx], (out_dim, in_dim, kernel_size),
                              dtype=jnp.float32) / math.sqrt(fan_in)
        b = 0.1 * jax.random.normal(keys[2 * idx + 1], (out_dim,), jnp.float32)
        head.append((w, b))
    fan_in = feat_dim * kernel_size
    w_off = jax.random.normal(keys[-2], (num_offsets, feat_dim, kernel_size),
                              dtype=jnp.float32) / math.sqrt(fan_in)
    b_off = 0.1 * jax.random.normal(keys[-1], (num_offsets,), jnp.float32)
    scales = 0.5 + 0.75 * jnp.arange(fpn_levels, dtype=jnp.float32)
    return {"head": head, "offset": (w_off, b_off), "scales": scales}


# ----------------------------------------------------------------------------
# Pure-JAX reference (mirrors the PyTorch module)
# ----------------------------------------------------------------------------
def _conv1d_nct_ref(x_bct, w_oik, b_o):
    xp = jnp.pad(x_bct, ((0, 0), (0, 0), (1, 1)))
    y = (jnp.einsum("bct,oc->bot", xp[:, :, :-2], w_oik[:, :, 0]) +
         jnp.einsum("bct,oc->bot", xp[:, :, 1:-1], w_oik[:, :, 1]) +
         jnp.einsum("bct,oc->bot", xp[:, :, 2:], w_oik[:, :, 2]))
    return y + b_o[None, :, None]


def reg_head_forward_ref(params, fpn_feats, fpn_masks):
    out_offsets = ()
    for l, (cur_feat, cur_mask) in enumerate(zip(fpn_feats, fpn_masks)):
        m = cur_mask.astype(cur_feat.dtype)
        cur = cur_feat
        for (w, b) in params["head"]:
            cur = jnp.maximum(_conv1d_nct_ref(cur, w, b) * m, 0.0)
        off = _conv1d_nct_ref(cur, *params["offset"]) * m
        out_offsets += (jnp.maximum(off * params["scales"][l], 0.0),)
    return out_offsets


if __name__ == "__main__":
    B, input_dim, feat_dim, num_bins = 2, 16, 32, 16
    fpn_levels = 2
    key = jax.random.PRNGKey(0)
    k_param, k_f0, k_f1 = jax.random.split(key, 3)

    params = init_reg_head_params(k_param, input_dim, feat_dim, fpn_levels,
                                  num_bins=num_bins)

    # Two FPN levels: [B, C, T] feats, [B, 1, T] bool masks (per-batch lengths).
    T0, T1 = 512, 256
    feat0 = jax.random.normal(k_f0, (B, input_dim, T0), dtype=jnp.float32)
    feat1 = jax.random.normal(k_f1, (B, input_dim, T1), dtype=jnp.float32)
    len0 = jnp.array([448, 320])
    len1 = jnp.array([224, 160])
    mask0 = jnp.arange(T0)[None, None, :] < len0[:, None, None]
    mask1 = jnp.arange(T1)[None, None, :] < len1[:, None, None]

    fpn_feats = [feat0, feat1]
    fpn_masks = [mask0, mask1]

    out = reg_head_forward(params, fpn_feats, fpn_masks)
    out = jax.block_until_ready(out)

    ref = reg_head_forward_ref(params, fpn_feats, fpn_masks)
    for o, r in zip(out, ref):
        assert o.shape == r.shape, (o.shape, r.shape)
        err = float(jnp.max(jnp.abs(o - r)))
        assert jnp.allclose(o, r, atol=1e-4, rtol=1e-4), err

    print("KERNEL_OK")
</pallas_src>

<mosaic_0001>
module attributes {stable_mosaic.version = 11 : i64} {
  func.func @_reg_head_fused_kernel(%arg0: i32, %arg1: memref<1x16x768xf32, #tpu.memory_space<vmem>>, %arg2: memref<1x1x768xf32, #tpu.memory_space<vmem>>, %arg3: memref<1x1x768xf32, #tpu.memory_space<vmem>>, %arg4: memref<1x768xf32, #tpu.memory_space<vmem>>, %arg5: memref<1x768xf32, #tpu.memory_space<vmem>>, %arg6: memref<32x48xf32, #tpu.memory_space<vmem>>, %arg7: memref<32x1xf32, #tpu.memory_space<vmem>>, %arg8: memref<32x96xf32, #tpu.memory_space<vmem>>, %arg9: memref<32x1xf32, #tpu.memory_space<vmem>>, %arg10: memref<40x96xf32, #tpu.memory_space<vmem>>, %arg11: memref<40x1xf32, #tpu.memory_space<vmem>>, %arg12: memref<1x40x768xf32, #tpu.memory_space<vmem>>) attributes {dimension_semantics = [#tpu.dimension_semantics<parallel>], iteration_bounds = array<i64: 2>, scalar_prefetch = 0 : i64, scratch_operands = 0 : i64, tpu.core_type = #tpu.core_type<tc>, window_params = [{transform_indices = @transform_0, window_bounds = array<i64: 1, 16, 768>}, {transform_indices = @transform_1, window_bounds = array<i64: 1, 1, 768>}, {transform_indices = @transform_2, window_bounds = array<i64: 1, 1, 768>}, {pipeline_mode = #tpu.pipeline_mode<synchronous>, transform_indices = @transform_3, window_bounds = array<i64: 1, 768>}, {pipeline_mode = #tpu.pipeline_mode<synchronous>, transform_indices = @transform_4, window_bounds = array<i64: 1, 768>}, {pipeline_mode = #tpu.pipeline_mode<synchronous>, transform_indices = @transform_5, window_bounds = array<i64: 32, 48>}, {pipeline_mode = #tpu.pipeline_mode<synchronous>, transform_indices = @transform_6, window_bounds = array<i64: 32, 1>}, {pipeline_mode = #tpu.pipeline_mode<synchronous>, transform_indices = @transform_7, window_bounds = array<i64: 32, 96>}, {pipeline_mode = #tpu.pipeline_mode<synchronous>, transform_indices = @transform_8, window_bounds = array<i64: 32, 1>}, {pipeline_mode = #tpu.pipeline_mode<synchronous>, transform_indices = @transform_9, window_bounds = array<i64: 40, 96>}, {pipeline_mode = #tpu.pipeline_mode<synchronous>, transform_indices = @transform_10, window_bounds = array<i64: 40, 1>}, {transform_indices = @transform_11, window_bounds = array<i64: 1, 40, 768>}]} {
    %c0 = arith.constant 0 : index
    %c0_0 = arith.constant 0 : index
    %c0_1 = arith.constant 0 : index
    %0 = vector.load %arg1[%c0, %c0_0, %c0_1] : memref<1x16x768xf32, #tpu.memory_space<vmem>>, vector<1x16x768xf32>
    %1 = vector.shape_cast %0 : vector<1x16x768xf32> to vector<16x768xf32>
    %c0_2 = arith.constant 0 : index
    %c0_3 = arith.constant 0 : index
    %c0_4 = arith.constant 0 : index
    %2 = vector.load %arg2[%c0_2, %c0_3, %c0_4] : memref<1x1x768xf32, #tpu.memory_space<vmem>>, vector<1x1x768xf32>
    %3 = vector.shape_cast %2 : vector<1x1x768xf32> to vector<1x768xf32>
    %c0_5 = arith.constant 0 : index
    %c0_6 = arith.constant 0 : index
    %c0_7 = arith.constant 0 : index
    %4 = vector.load %arg3[%c0_5, %c0_6, %c0_7] : memref<1x1x768xf32, #tpu.memory_space<vmem>>, vector<1x1x768xf32>
    %5 = vector.shape_cast %4 : vector<1x1x768xf32> to vector<1x768xf32>
    %c0_8 = arith.constant 0 : index
    %c0_9 = arith.constant 0 : index
    %6 = vector.load %arg4[%c0_8, %c0_9] : memref<1x768xf32, #tpu.memory_space<vmem>>, vector<1x768xf32>
    %c0_10 = arith.constant 0 : index
    %c0_11 = arith.constant 0 : index
    %7 = vector.load %arg5[%c0_10, %c0_11] : memref<1x768xf32, #tpu.memory_space<vmem>>, vector<1x768xf32>
    %c1_i32 = arith.constant 1 : i32
    %8 = tpu.dynamic_rotate %1 by %c1_i32 dim 1 : vector<16x768xf32>, i32 -> vector<16x768xf32>
    %9 = vector.broadcast %6 : vector<1x768xf32> to vector<16x768xf32>
    %10 = arith.mulf %8, %9 : vector<16x768xf32>
    %c767_i32 = arith.constant 767 : i32
    %11 = tpu.dynamic_rotate %1 by %c767_i32 dim 1 : vector<16x768xf32>, i32 -> vector<16x768xf32>
    %12 = vector.broadcast %7 : vector<1x768xf32> to vector<16x768xf32>
    %13 = arith.mulf %11, %12 : vector<16x768xf32>
    %14 = tpu.concatenate %10, %1, %13 in 0 : vector<16x768xf32>, vector<16x768xf32>, vector<16x768xf32> -> vector<48x768xf32>
    %c0_12 = arith.constant 0 : index
    %c0_13 = arith.constant 0 : index
    %15 = vector.load %arg6[%c0_12, %c0_13] : memref<32x48xf32, #tpu.memory_space<vmem>>, vector<32x48xf32>
    %cst = arith.constant dense<0.000000e+00> : vector<32x768xf32>
    %16 = tpu.matmul %15, %14, %cst {dimension_numbers = #tpu.dot_dimension_numbers<[1], [0], [0], [1], [0, 0, 1, 1], [], []>} : vector<32x48xf32>, vector<48x768xf32>, vector<32x768xf32> -> vector<32x768xf32>
    %c0_14 = arith.constant 0 : index
    %c0_15 = arith.constant 0 : index
    %17 = vector.load %arg7[%c0_14, %c0_15] : memref<32x1xf32, #tpu.memory_space<vmem>>, vector<32x1xf32>
    %18 = vector.broadcast %17 : vector<32x1xf32> to vector<32x768xf32>
    %19 = arith.addf %16, %18 : vector<32x768xf32>
    %20 = vector.broadcast %3 : vector<1x768xf32> to vector<32x768xf32>
    %21 = arith.mulf %19, %20 : vector<32x768xf32>
    %cst_16 = arith.constant 0.000000e+00 : f32
    %22 = vector.broadcast %cst_16 : f32 to vector<32x768xf32>
    %23 = arith.maximumf %21, %22 : vector<32x768xf32>
    %c1_i32_17 = arith.constant 1 : i32
    %24 = tpu.dynamic_rotate %23 by %c1_i32_17 dim 1 : vector<32x768xf32>, i32 -> vector<32x768xf32>
    %25 = vector.broadcast %6 : vector<1x768xf32> to vector<32x768xf32>
    %26 = arith.mulf %24, %25 : vector<32x768xf32>
    %c767_i32_18 = arith.constant 767 : i32
    %27 = tpu.dynamic_rotate %23 by %c767_i32_18 dim 1 : vector<32x768xf32>, i32 -> vector<32x768xf32>
    %28 = vector.broadcast %7 : vector<1x768xf32> to vector<32x768xf32>
    %29 = arith.mulf %27, %28 : vector<32x768xf32>
    %30 = tpu.concatenate %26, %23, %29 in 0 : vector<32x768xf32>, vector<32x768xf32>, vector<32x768xf32> -> vector<96x768xf32>
    %c0_19 = arith.constant 0 : index
    %c0_20 = arith.constant 0 : index
    %31 = vector.load %arg8[%c0_19, %c0_20] : memref<32x96xf32, #tpu.memory_space<vmem>>, vector<32x96xf32>
    %cst_21 = arith.constant dense<0.000000e+00> : vector<32x768xf32>
    %32 = tpu.matmul %31, %30, %cst_21 {dimension_numbers = #tpu.dot_dimension_numbers<[1], [0], [0], [1], [0, 0, 1, 1], [], []>} : vector<32x96xf32>, vector<96x768xf32>, vector<32x768xf32> -> vector<32x768xf32>
    %c0_22 = arith.constant 0 : index
    %c0_23 = arith.constant 0 : index
    %33 = vector.load %arg9[%c0_22, %c0_23] : memref<32x1xf32, #tpu.memory_space<vmem>>, vector<32x1xf32>
    %34 = vector.broadcast %33 : vector<32x1xf32> to vector<32x768xf32>
    %35 = arith.addf %32, %34 : vector<32x768xf32>
    %36 = vector.broadcast %3 : vector<1x768xf32> to vector<32x768xf32>
    %37 = arith.mulf %35, %36 : vector<32x768xf32>
    %cst_24 = arith.constant 0.000000e+00 : f32
    %38 = vector.broadcast %cst_24 : f32 to vector<32x768xf32>
    %39 = arith.maximumf %37, %38 : vector<32x768xf32>
    %c1_i32_25 = arith.constant 1 : i32
    %40 = tpu.dynamic_rotate %39 by %c1_i32_25 dim 1 : vector<32x768xf32>, i32 -> vector<32x768xf32>
    %41 = vector.broadcast %6 : vector<1x768xf32> to vector<32x768xf32>
    %42 = arith.mulf %40, %41 : vector<32x768xf32>
    %c767_i32_26 = arith.constant 767 : i32
    %43 = tpu.dynamic_rotate %39 by %c767_i32_26 dim 1 : vector<32x768xf32>, i32 -> vector<32x768xf32>
    %44 = vector.broadcast %7 : vector<1x768xf32> to vector<32x768xf32>
    %45 = arith.mulf %43, %44 : vector<32x768xf32>
    %46 = tpu.concatenate %42, %39, %45 in 0 : vector<32x768xf32>, vector<32x768xf32>, vector<32x768xf32> -> vector<96x768xf32>
    %c0_27 = arith.constant 0 : index
    %c0_28 = arith.constant 0 : index
    %47 = vector.load %arg10[%c0_27, %c0_28] : memref<40x96xf32, #tpu.memory_space<vmem>>, vector<40x96xf32>
    %cst_29 = arith.constant dense<0.000000e+00> : vector<40x768xf32>
    %48 = tpu.matmul %47, %46, %cst_29 {dimension_numbers = #tpu.dot_dimension_numbers<[1], [0], [0], [1], [0, 0, 1, 1], [], []>} : vector<40x96xf32>, vector<96x768xf32>, vector<40x768xf32> -> vector<40x768xf32>
    %c0_30 = arith.constant 0 : index
    %c0_31 = arith.constant 0 : index
    %49 = vector.load %arg11[%c0_30, %c0_31] : memref<40x1xf32, #tpu.memory_space<vmem>>, vector<40x1xf32>
    %50 = vector.broadcast %49 : vector<40x1xf32> to vector<40x768xf32>
    %51 = arith.addf %48, %50 : vector<40x768xf32>
    %52 = vector.broadcast %5 : vector<1x768xf32> to vector<40x768xf32>
    %53 = arith.mulf %51, %52 : vector<40x768xf32>
    %cst_32 = arith.constant 0.000000e+00 : f32
    %54 = vector.broadcast %cst_32 : f32 to vector<40x768xf32>
    %55 = arith.maximumf %53, %54 : vector<40x768xf32>
    %c0_33 = arith.constant 0 : index
    %c0_34 = arith.constant 0 : index
    %c0_35 = arith.constant 0 : index
    %56 = vector.load %arg12[%c0_33, %c0_34, %c0_35] : memref<1x40x768xf32, #tpu.memory_space<vmem>>, vector<1x40x768xf32>
    %57 = vector.shape_cast %56 : vector<1x40x768xf32> to vector<40x768xf32>
    %58 = vector.shape_cast %55 : vector<40x768xf32> to vector<1x40x768xf32>
    tpu.vector_store %arg12[%c0_33, %c0_34, %c0_35], %58 {strides = array<i32>} : memref<1x40x768xf32, #tpu.memory_space<vmem>>, vector<1x40x768xf32>,
    return
  }
  func.func @transform_0(%arg0: i32) -> (i32, i32, i32) {
    %c0_i32 = arith.constant 0 : i32
    %c0_i32_0 = arith.constant 0 : i32
    %c0_i32_1 = arith.constant 0 : i32
    return %arg0, %c0_i32, %c0_i32_0 : i32, i32, i32
  }
  func.func @transform_1(%arg0: i32) -> (i32, i32, i32) {
    %c0_i32 = arith.constant 0 : i32
    %c0_i32_0 = arith.constant 0 : i32
    %c0_i32_1 = arith.constant 0 : i32
    return %arg0, %c0_i32, %c0_i32_0 : i32, i32, i32
  }
  func.func @transform_2(%arg0: i32) -> (i32, i32, i32) {
    %c0_i32 = arith.constant 0 : i32
    %c0_i32_0 = arith.constant 0 : i32
    %c0_i32_1 = arith.constant 0 : i32
    return %arg0, %c0_i32, %c0_i32_0 : i32, i32, i32
  }
  func.func @transform_3(%arg0: i32) -> (i32, i32) {
    %c0_i32 = arith.constant 0 : i32
    %c0_i32_0 = arith.constant 0 : i32
    %c0_i32_1 = arith.constant 0 : i32
    return %c0_i32, %c0_i32_0 : i32, i32
  }
  func.func @transform_4(%arg0: i32) -> (i32, i32) {
    %c0_i32 = arith.constant 0 : i32
    %c0_i32_0 = arith.constant 0 : i32
    %c0_i32_1 = arith.constant 0 : i32
    return %c0_i32, %c0_i32_0 : i32, i32
  }
  func.func @transform_5(%arg0: i32) -> (i32, i32) {
    %c0_i32 = arith.constant 0 : i32
    %c0_i32_0 = arith.constant 0 : i32
    %c0_i32_1 = arith.constant 0 : i32
    return %c0_i32, %c0_i32_0 : i32, i32
  }
  func.func @transform_6(%arg0: i32) -> (i32, i32) {
    %c0_i32 = arith.constant 0 : i32
    %c0_i32_0 = arith.constant 0 : i32
    %c0_i32_1 = arith.constant 0 : i32
    return %c0_i32, %c0_i32_0 : i32, i32
  }
  func.func @transform_7(%arg0: i32) -> (i32, i32) {
    %c0_i32 = arith.constant 0 : i32
    %c0_i32_0 = arith.constant 0 : i32
    %c0_i32_1 = arith.constant 0 : i32
    return %c0_i32, %c0_i32_0 : i32, i32
  }
  func.func @transform_8(%arg0: i32) -> (i32, i32) {
    %c0_i32 = arith.constant 0 : i32
    %c0_i32_0 = arith.constant 0 : i32
    %c0_i32_1 = arith.constant 0 : i32
    return %c0_i32, %c0_i32_0 : i32, i32
  }
  func.func @transform_9(%arg0: i32) -> (i32, i32) {
    %c0_i32 = arith.constant 0 : i32
    %c0_i32_0 = arith.constant 0 : i32
    %c0_i32_1 = arith.constant 0 : i32
    return %c0_i32, %c0_i32_0 : i32, i32
  }
  func.func @transform_10(%arg0: i32) -> (i32, i32) {
    %c0_i32 = arith.constant 0 : i32
    %c0_i32_0 = arith.constant 0 : i32
    %c0_i32_1 = arith.constant 0 : i32
    return %c0_i32, %c0_i32_0 : i32, i32
  }
  func.func @transform_11(%arg0: i32) -> (i32, i32, i32) {
    %c0_i32 = arith.constant 0 : i32
    %c0_i32_0 = arith.constant 0 : i32
    %c0_i32_1 = arith.constant 0 : i32
    return %arg0, %c0_i32, %c0_i32_0 : i32, i32, i32
  }
}

</mosaic_0001>

<bundles_post_ra>
// kernel: tpu_custom_call.1
= control target key start
LH: loop header
LB: loop body
LE: loop exit
PB: predicated region body
PF: predicated region fallthrough
CT: control target
= control target key end

     0   :  { %s4697_s0 = inlined_call_operand.hbm [shape: f32[2,16,768], index: 0, kind: input, shape index: {}]   ;;  %s4698_s1 = inlined_call_operand.hbm [shape: f32[2,1,768], index: 1, kind: input, shape index: {}]   ;;  %s4699_s2 = inlined_call_operand.hbm [shape: f32[2,1,768], index: 2, kind: input, shape index: {}]   ;;  %s4700_s3 = inlined_call_operand.vmem [shape: f32[1,768], index: 3, kind: input, shape index: {}]   ;;  %s4701_s4 = inlined_call_operand.vmem [shape: f32[1,768], index: 4, kind: input, shape index: {}]   ;;  %s4702_s5 = inlined_call_operand.vmem [shape: f32[32,48], index: 5, kind: input, shape index: {}]   ;;  %s4703_s6 = inlined_call_operand.vmem [shape: f32[32,1], index: 6, kind: input, shape index: {}]   ;;  %s4704_s7 = inlined_call_operand.vmem [shape: f32[32,96], index: 7, kind: input, shape index: {}]   ;;  %s4705_s8 = inlined_call_operand.vmem [shape: f32[32,1], index: 8, kind: input, shape index: {}]   ;;  %s4706_s9 = inlined_call_operand.vmem [shape: f32[40,96], index: 9, kind: input, shape index: {}]   ;;  %s4707_s10 = inlined_call_operand.vmem [shape: f32[40,1], index: 10, kind: input, shape index: {}]   ;;  %s4708_s11 = inlined_call_operand.hbm [shape: f32[2,40,768], index: 11, kind: output, shape index: {}]  }
   0x1   :  { %4764 = sst [smem:[#allocation39_spill]] %s4697_s0 }
   0x2   :  { %4765 = sst [smem:[#allocation40_spill]] %s4698_s1 }
   0x3   :  { %4766 = sst [smem:[#allocation41_spill]] %s4708_s11 }
   0x4   :  { %16 = vsyncpa [#allocation3], 0 }
   0x5   :  { %18 = vsyncpa [#allocation3 + $0x1], 0 }
   0x6   :  { %19 = vsyncpa [#allocation6], 0 }
   0x7   :  { %21 = vsyncpa [#allocation6 + $0x1], 0 }
   0x8   :  { %22 = vsyncpa [#allocation4], 0 }
   0x9   :  { %24 = vsyncpa [#allocation4 + $0x1], 0  ;;  %s2914_s17 = smov 0   ;;  %s2916_s18 = smov 0  }
   0xa   :  { %s2918_s19 = smov 0   ;;  %s2920_s20 = smov 0  }
   0xb LB: > { %4767 = sst [smem:[#allocation12_spill]] %s2828_s17  ;;  %s2935_s21 = sadd.s32 4294967295, %s2840_s20   ;;  %s2840_s20 = sphi %s2920_s20, %s4873_s20   ;;  %s2836_s19 = sphi %s2918_s19, %s4875_s19   ;;  %s2832_s18 = sphi %s2916_s18, %s4877_s18   ;;  %s2828_s17 = sphi %s2914_s17, %s4876_s17  }
   0xc   : > { %4768 = sst [smem:[#allocation13_spill]] %s2836_s19  ;;  %s2369_s22 = sadd.s32 4294967294, %s2840_s20  }
   0xd   : > { %s2939_s23 = sadd.s32 1, %s2840_s20   ;;  %s37_s24 = sadd.s32 1, %s2836_s19 }
   0xe   : > { %4769 = sst [smem:[#allocation14_spill]] %s2939_s23  ;;  %s34_s25 = ssub.s32 %s2840_s20, %s2939_s23 }
   0xf   : > { %p44_p0 = scmp.ne.s32.totalorder %s2836_s19, %s2832_s18  ;;  %p35_p1 = scmp.eq.s32.totalorder %s34_s25, 0 }
  0x10   : > { %p45_p2 = scmp.eq.s32.totalorder %s2840_s20, 0  ;;  %p50_p3 = scmp.ne.s32.totalorder %s2832_s18, %s2828_s17 }
  0x11   : > { %p51_p4 = scmp.eq.s32.totalorder %s2935_s21, 0  ;;  %p294_p7 = scmp.eq.s32.totalorder %s2935_s21, 1 }
  0x12   : > { %s2951_s26 = scalar_select %p35_p1, %s2836_s19, %s37_s24  }
  0x13   : > { %p46_p5 = por %p45_p2, %p44_p0  ;;  %p2953_p6 = por %p51_p4, %p50_p3 }
  0x14   : > { %4770 = sst [smem:[#allocation15_spill]] %s2951_s26  ;;  %p300_p8 = scmp.eq.s32.totalorder %s2369_s22, 1 }
  0x15   : > { %s4771_s27 = scalar_select %p2953_p6, 1, 0 }
  0x16   : > { %p2636_p10 = scmp.lt.s32.totalorder %s2840_s20, 2  ;;  %p2960_p11 = por %p294_p7, %p44_p0 }
  0x17   : > { %p2964_p12 = por %p300_p8, %p50_p3  ;;  %s2969_s30 = sand.u32 1, %s2836_s19  }
  0x18   : > { %s4772_s28 = scalar_select %p2960_p11, 1, 0 }
  0x19   : > { %s4774_s29 = scalar_select %p2964_p12, 1, 0 }
  0x1a   : > { %4773 = sst [smem:[#allocation16_spill]] %s4772_s28  ;;  %p2971_p13 = pnand %p2636_p10, %p46_p5 }
  0x1b   : > { %4775 = sst [smem:[#allocation17_spill]] %s4774_s29  ;;  %s365_s13 = sand.u32 1, %s2840_s20  }
  0x1c   : > { %s4776_s12 = scalar_select %p2971_p13, 1, 0 }
  0x1d   : > { %s4712_s14 = smul.u32 6, %s2969_s30  ;;  %s4777_s1 = sld [smem:[#allocation40_spill]] }
  0x1e   : > { %s4713_s15 = smul.u32 96, %s2840_s20  ;;  %s2990_s19 = scalar_lea.sflag [#allocation6], %s365_s13 }
  0x1f   : > { %s369_s16 = scalar_lea.vmem [#allocation5], %s4712_s14  ;;  %p2996_p2 = pneg %p2971_p13 }
  0x20   : > { %s377_s22 = sshll.u32 %s369_s16, 4  ;;  %s2988_s22 = int_to_ptr.vmem [resolvable:$true] %s377_s22 }
  0x23   : > { %s2986_s26 = scalar_lea.hbm %s4777_s1, %s4713_s15  ;;  %s2685_s14 = scalar_lea.hbm %s4777_s1, 192 }
  0x24   : > { %s2680_s23 = scalar_lea.hbm %s2986_s26, 96  ;;  %p2686_p5 = scmp.lt.u32.totalorder %s2986_s26, %s4777_s1 }
  0x25   : > { %p2681_p1 = scmp.ne.s32.totalorder %s2986_s26, %s2680_s23  ;;  %p2687_p7 = scmp.lt.u32.totalorder %s2685_s14, %s2680_s23 }
  0x26   : > { %p2689_p10 = scmp.lt.u32.totalorder %s2680_s23, %s2986_s26 }
  0x27   : > { %p2683_p3 = pnand %p2996_p2, %p2681_p1  ;;  %p2688_p8 = por %p2687_p7, %p2686_p5 }
  0x29   : > { %p2684_p4 = pneg %p2683_p3  ;;  %p2690_p9 = por %p2689_p10, %p2688_p8 }
  0x2b   : > { %p2691_p0 = pnand %p2690_p9, %p2684_p4 }
  0x2d   : > { %2694 = shalt.err (!%p2691_p0)
}
  0x2e   : > { %s2695_s13 = scalar_lea.vmem %s2988_s22, 96  ;;  %s2842_s24 = smov [#allocation5]  }
  0x2f   : > { %p2696_p1 = scmp.ne.s32.totalorder %s2988_s22, %s2695_s13  ;;  %s2700_s25 = sshll.u32 %s2842_s24, 4  ;;  %s2701_s25 = int_to_ptr.vmem [resolvable:$false] %s2700_s25 }
  0x30   : > { %s2702_s29 = scalar_lea.vmem %s2701_s25, 192  ;;  %p2703_p11 = scmp.lt.s32.totalorder %s2988_s22, %s2701_s25 }
  0x31   : > { %p2698_p3 = pnand %p2696_p1, %p2996_p2  ;;  %p2704_p6 = scmp.lt.s32.totalorder %s2702_s29, %s2695_s13 }
  0x33   : > { %p2699_p12 = pneg %p2698_p3  ;;  %p2705_p5 = por %p2704_p6, %p2703_p11 }
  0x35   : > { %p2706_p7 = pnand %p2705_p5, %p2699_p12 }
  0x37   : > { %2709 = shalt.err (!%p2706_p7)
}
  0x38   : > { %2628 = dma.hbm_to_vmem [thread:$0]  (!%p2971_p13), %s2986_s26, 96, %s2988_s22, %s2990_s19  }
  0x39   : > { %p401_p9 = scmp.lt.s32.totalorder %s2840_s20, 3  ;;  %s2604_s23 = smul.u32 96, %s2969_s30 }
  0x3a   : > { %p4779_p0 = scmp.ge.s32.totalorder %s2840_s20, 1  ;;  %s2605_s15 = smul.u32 1536, %s2840_s20 }
  0x3b   : > { %s4781_s0 = sld [smem:[#allocation39_spill]]  ;;  %s348_s29 = scalar_lea.vmem [#allocation2], %s2604_s23 }
  0x3c   : > { %p3024_p4 = pnand %p4779_p0, %p401_p9  ;;  %s355_s1 = sshll.u32 %s348_s29, 4  ;;  %s3034_s1 = int_to_ptr.vmem [resolvable:$true] %s355_s1 }
  0x3d   : > { %s345_s26 = scalar_lea.sflag [#allocation3], %s2969_s30 }
  0x3e   : > { %s4780_s14 = scalar_select %p3024_p4, 1, 0 }
  0x41   : > { %s3032_s25 = scalar_lea.hbm %s4781_s0, %s2605_s15  ;;  %s2715_s13 = scalar_lea.hbm %s4781_s0, 3072 }
  0x42   : > { %s2710_s22 = scalar_lea.hbm %s3032_s25, 1536  ;;  %p2716_p8 = scmp.lt.u32.totalorder %s3032_s25, %s4781_s0 }
  0x43   : > { %p2711_p6 = scmp.ne.s32.totalorder %s3032_s25, %s2710_s22  ;;  %p2717_p10 = scmp.lt.u32.totalorder %s2715_s13, %s2710_s22 }
  0x44   : > { %p2719_p3 = scmp.lt.u32.totalorder %s2710_s22, %s3032_s25 }
  0x45   : > { %p2713_p11 = pnand %p2711_p6, %p2996_p2  ;;  %p2718_p1 = por %p2717_p10, %p2716_p8 }
  0x47   : > { %p2714_p12 = pneg %p2713_p11  ;;  %p2720_p5 = por %p2719_p3, %p2718_p1 }
  0x49   : > { %p2721_p7 = pnand %p2720_p5, %p2714_p12 }
  0x4b   : > { %2724 = shalt.err (!%p2721_p7)
}
  0x4c   : > { %s2725_s23 = scalar_lea.vmem %s3034_s1, 1536  ;;  %s2843_s11 = smov [#allocation2]  }
  0x4d   : > { %p2726_p9 = scmp.ne.s32.totalorder %s3034_s1, %s2725_s23  ;;  %s2730_s17 = sshll.u32 %s2843_s11, 4  ;;  %s2731_s17 = int_to_ptr.vmem [resolvable:$false] %s2730_s17 }
  0x4e   : > { %s2732_s29 = scalar_lea.vmem %s2731_s17, 3072  ;;  %p2733_p11 = scmp.lt.s32.totalorder %s3034_s1, %s2731_s17 }
  0x4f   : > { %p2728_p0 = pnand %p2726_p9, %p2996_p2  ;;  %p2734_p4 = scmp.lt.s32.totalorder %s2732_s29, %s2725_s23 }
  0x51   : > { %p2729_p6 = pneg %p2728_p0  ;;  %p2735_p8 = por %p2734_p4, %p2733_p11 }
  0x53   : > { %p2736_p10 = pnand %p2735_p8, %p2729_p6 }
  0x55   : > { %2739 = shalt.err (!%p2736_p10)
}
  0x56   : > { %s2844_s22 = smov 768   ;;  %s2845_s13 = smov 48  }
  0x57   : > { %2625 = dma.hbm_to_vmem [thread:$0]  (!%p2971_p13), %s3032_s25, 1536, %s3034_s1, %s345_s26, %s2844_s22, %s2844_s22, %s2845_s13  }
  0x58   : > { %s4782_s15 = smul.u32 96, %s2840_s20  ;;  %s2745_s26 = scalar_lea.hbm %s4699_s2, 192 }
  0x59   : > { %s4783_s17 = smul.u32 6, %s2969_s30 }
  0x5a   : > { %s3065_s23 = scalar_lea.hbm %s4699_s2, %s4782_s15 }
  0x5b   : > { %s388_s29 = scalar_lea.vmem [#allocation7], %s4783_s17  ;;  %s2740_s28 = scalar_lea.hbm %s3065_s23, 96 }
  0x5c   : > { %s396_s0 = sshll.u32 %s388_s29, 4  ;;  %p2741_p4 = scmp.ne.s32.totalorder %s3065_s23, %s2740_s28  ;;  %s397_s0 = int_to_ptr.vmem [resolvable:$true] %s396_s0 }
  0x5d   : > { %p2746_p3 = scmp.lt.u32.totalorder %s3065_s23, %s4699_s2  ;;  %p2747_p5 = scmp.lt.u32.totalorder %s2745_s26, %s2740_s28 }
  0x5e   : > { %p2743_p12 = pnand %p2741_p4, %p2996_p2  ;;  %p2749_p9 = scmp.lt.u32.totalorder %s2740_s28, %s3065_s23 }
  0x5f   : > { %p2748_p7 = por %p2747_p5, %p2746_p3 }
  0x60   : > { %p2744_p1 = pneg %p2743_p12 }
  0x61   : > { %p2750_p0 = por %p2749_p9, %p2748_p7 }
  0x63   : > { %p2751_p6 = pnand %p2750_p0, %p2744_p1 }
  0x65   : > { %2754 = shalt.err (!%p2751_p6)
}
  0x66   : > { %s2755_s30 = scalar_lea.vmem %s397_s0, 96  ;;  %s2846_s15 = smov [#allocation7]  }
  0x67   : > { %p2756_p11 = scmp.ne.s32.totalorder %s397_s0, %s2755_s30  ;;  %s2760_s24 = sshll.u32 %s2846_s15, 4  ;;  %s2761_s24 = int_to_ptr.vmem [resolvable:$false] %s2760_s24 }
  0x68   : > { %s2762_s11 = scalar_lea.vmem %s2761_s24, 192  ;;  %p2763_p4 = scmp.lt.s32.totalorder %s397_s0, %s2761_s24 }
  0x69   : > { %p2758_p8 = pnand %p2756_p11, %p2996_p2  ;;  %p2764_p12 = scmp.lt.s32.totalorder %s2762_s11, %s2755_s30 }
  0x6b   : > { %p2759_p10 = pneg %p2758_p8  ;;  %p2765_p13 = por %p2764_p12, %p2763_p4 }
  0x6d   : > { %p2766_p3 = pnand %p2765_p13, %p2759_p10 }
  0x6f   : > { %2769 = shalt.err (!%p2766_p3)
}
  0x70   : > { %p4784_p5 = scmp.ne.s32.totalorder %s4776_s12, 0  ;;  %p4785_p1 = scmp.ne.s32.totalorder %s4780_s14, 0 }
  0x72   : > { %2631 = dma.hbm_to_vmem [thread:$0]  (!%p4784_p5), %s3065_s23, 96, %s397_s0, %s2990_s19  }
  0x73   : > { %405 = sbr.rel (%p4785_p1) target bundleno = 1382 (0x566), region = 64 }
  0x7a   : > { %s3090_s28 = sand.u32 1, %s2832_s18   ;;  %p4786_p13 = scmp.ne.s32.totalorder %s4771_s27, 0 }
  0x7b   : > { %s2610_s16 = smul.u32 96, %s3090_s28  ;;  %s408_s17 = scalar_lea.sflag [#allocation3], %s3090_s28 }
  0x7d   : > { %s3094_s29 = scalar_lea.vmem [#allocation2], %s2610_s16 }
  0x7e   : > { %2815 = dma.done.wait (%p4786_p13), %s408_s17, 1536  }
  0x7f   : > { %2817 = vsyncadd (%p4786_p13), %s408_s17, 4294965760  ;;  %s416_s0 = sand.u32 1, %s2935_s21   ;;  %s2611_s19 = smul.u32 6, %s3090_s28 }
  0x80   : > { %s417_s12 = scalar_lea.sflag [#allocation6], %s416_s0 }
  0x81   : > { %s3104_s14 = scalar_lea.vmem [#allocation5], %s2611_s19 }
  0x82   : > { %2819 = dma.done.wait (%p4786_p13), %s417_s12, 192  }
  0x83   : > { %2821 = vsyncadd (%p4786_p13), %s417_s12, 4294967104  ;;  %v479_v0 = vld [vmem:[%s3094_s29 + $0x8] sm:$0xff]  ;;  %v478_v1 = vld [vmem:[%s3094_s29] sm:$0xff]  ;;  %s2847_s23 = smov 1   ;;  %s2848_s27 = smov 127   ;;  %v4722_v14 = vmov 0.0   ;;  %v518_v24 = vlaneseq }
  0x84   : > { %498 = vrot.lane.b32.xlu1 %v479_v0, %s2847_s23  ;;  %494 = vrot.lane.b32.xlu0 %v478_v1, %s2847_s23  ;;  %v485_v2 = vld [vmem:[%s3094_s29 + $0x38] sm:$0xff]  ;;  %v484_v3 = vld [vmem:[%s3094_s29 + $0x30] sm:$0xff]  ;;  %v2850_v21 = vmov 0   ;;  %vm684_vm2 = vcmask 392192   ;;  %vm1263_vm3 = vcmask 785408   ;;  %s429_s11 = scalar_lea.vmem [#allocation7], %s2611_s19 }
  0x85   : > { %v3117_v4 = vld [vmem:[%s3094_s29 + $0x40] sm:$0xff]  ;;  %v3120_v5 = vld [vmem:[%s3094_s29 + $0x10] sm:$0xff]  ;;  %v3135_v10 = vld [vmem:[%s3094_s29 + $0x58] sm:$0xff]  ;;  %v3140_v12 = vpack.c.bf16 %v485_v2, %v479_v0  ;;  %v3142_v13 = vpack.c.bf16 %v484_v3, %v478_v1  ;;  %761 = vmatprep.mubr.f32.mxu0 %v4722_v14  ;;  %779 = vmatprep.mubr.f32.mxu1 %v4722_v14  ;;  %v3204_v25 = vshrl.u32 %v518_v24, 7  ;;  %v3206_v26 = vand.u32 127, %v518_v24  ;;  %s2612_s16 = smul.u32 240, %s3090_s28 }
  0x86   : > { %v2436_v6 = vpack.c.bf16 %v3117_v4, %v3120_v5  ;;  %v3125_v7 = vld [vmem:[%s3094_s29 + $0x50] sm:$0xff]  ;;  %v3128_v8 = vld [vmem:[%s3094_s29 + $0x20] sm:$0xff]  ;;  %v3138_v11 = vld [vmem:[%s3094_s29 + $0x28] sm:$0xff]  ;;  %2678 = vset.pattern.permute.xlu0 %v2850_v21  ;;  %2679 = vset.pattern.permute.xlu1 %v2850_v21  ;;  %s2613_s17 = smul.u32 3840, %s2935_s21  ;;  %s4866_s0 = sld [smem:[#allocation16_spill]] }
  0x87   : > { %v2448_v9 = vpack.c.bf16 %v3125_v7, %v3128_v8  ;;  %v2446_v15 = vpack.c.bf16 %v3135_v10, %v3138_v11  ;;  %v3165_v16 = vld [vmem:[%s3094_s29 + $0x48] sm:$0xff]  ;;  %v3168_v17 = vld [vmem:[%s3094_s29 + $0x18] sm:$0xff]  ;;  %v660_v19 = vld [vmem:[%s4703_s6] sm:$0xff]  ;;  %v3209_v27 = vsub.s32 1, %v3204_v25  ;;  %vm520_vm0 = vcmp.lt.s32.totalorder %v3206_v26, 1  ;;  %s4546_s19 = scalar_lea.vmem [#allocation8], %s2612_s16 }
  0x88   : > { %500 = vrot.lane.b32.xlu1 %v485_v2, %s2847_s23  ;;  %496 = vrot.lane.b32.xlu0 %v484_v3, %s2847_s23  ;;  %v2434_v18 = vpack.c.bf16 %v3165_v16, %v3168_v17  ;;  %v661_v20 = vld [vmem:[%s4703_s6 + $0x8] sm:$0xff]  ;;  %v663_v22 = vld [vmem:[%s4703_s6 + $0x18] sm:$0xff]  ;;  %v3224_v32 = vsub.s32 0, %v3204_v25  ;;  %vm600_vm1 = vcmp.lt.s32.totalorder %v3206_v26, 127  ;;  %v3277_v59 = vsub.s32 5, %v3204_v25  ;;  %s2253_s29 = sshll.u32 %s4546_s19, 4  ;;  %s4651_s29 = int_to_ptr.vmem [resolvable:$true] %s2253_s29 }
  0x89   : > { %v662_v23 = vld [vmem:[%s4703_s6 + $0x10] sm:$0xff]  ;;  %4787 = vst [vmem:[#allocation18_spill] sm:$0xff] %v3209_v27  ;;  %v3214_v28 = vld [vmem:[%s4700_s3] sm:$0x3f]  ;;  %s4867_s21 = sld [smem:[#allocation41_spill]]  ;;  %s2240_s25 = scalar_lea.sflag [#allocation4], %s3090_s28 }
  0x8a   : > { %v3221_v31 = vrot.slane %v3214_v28, %v3209_v27  ;;  %4789 = vst [vmem:[#allocation20_spill] sm:$0xff] %v3224_v32  ;;  %v3238_v39 = vrot.slane %v3214_v28, %v3224_v32  ;;  %v3249_v47 = vld [vmem:[%s4701_s4] sm:$0x3f]  ;;  %4790 = vst [vmem:[#allocation21_spill] sm:$0xff] %v3277_v59  ;;  %v4531_v26 = vld [vmem:[%s429_s11] sm:$0x3f] }
  0x8b   : > { %v3254_v51 = vrot.slane %v3249_v47, %v3209_v27  ;;  %v3272_v58 = vrot.slane %v3249_v47, %v3224_v32  ;;  %s2770_s26 = scalar_lea.vmem %s4651_s29, 3840  ;;  %s2851_s22 = smov [#allocation8]  }
  0x8c   : > { %516 = vrot.lane.b32.xlu1 %v3135_v10, %s2847_s23  ;;  %514 = vrot.lane.b32.xlu0 %v3138_v11, %s2847_s23  ;;  %4788 = vst [vmem:[#allocation19_spill] sm:$0xff] %v3221_v31  ;;  %p2771_p2 = scmp.ne.s32.totalorder %s4651_s29, %s2770_s26  ;;  %p4868_p7 = scmp.ne.s32.totalorder %s4866_s0, 0 }
  0x8d   : > { %s2774_s13 = sshll.u32 %s2851_s22, 4  ;;  %s2775_s13 = int_to_ptr.vmem [resolvable:$false] %s2774_s13 }
  0x8e   : > { %p2772_p9 = pnand %p2771_p2, %p4868_p7  ;;  %s2776_s30 = scalar_lea.vmem %s2775_s13, 7680 }
  0x8f   : > { %s4649_s1 = scalar_lea.hbm %s4867_s21, %s2613_s17  ;;  %p2777_p6 = scmp.lt.s32.totalorder %s4651_s29, %s2775_s13 }
  0x90   : > { %582 = vrot.lane.b32.xlu1 %v485_v2, %s2848_s27  ;;  %580 = vrot.lane.b32.xlu0 %v479_v0, %s2848_s27  ;;  %p2773_p0 = pneg %p2772_p9  ;;  %p2778_p11 = scmp.lt.s32.totalorder %s2776_s30, %s2770_s26 }
  0x92   : > { %p2779_p8 = por %p2778_p11, %p2777_p6 }
  0x94   : > { %586 = vrot.lane.b32.xlu1 %v3117_v4, %s2848_s27  ;;  %584 = vrot.lane.b32.xlu0 %v3120_v5, %s2848_s27  ;;  %p2780_p10 = pnand %p2779_p8, %p2773_p0 }
  0x98   : > { %578 = vrot.lane.b32.xlu1 %v484_v3, %s2848_s27  ;;  %576 = vrot.lane.b32.xlu0 %v478_v1, %s2848_s27  ;;  %v3287_v3 = vrot.slane %v3214_v28, %v3277_v59 }
  0x9c   : > { %512 = vrot.lane.b32.xlu1 %v3125_v7, %s2847_s23  ;;  %510 = vrot.lane.b32.xlu0 %v3128_v8, %s2847_s23 }
  0xa0   : > { %508 = vrot.lane.b32.xlu1 %v3165_v16, %s2847_s23  ;;  %506 = vrot.lane.b32.xlu0 %v3168_v17, %s2847_s23 }
  0xa4   : > { %598 = vrot.lane.b32.xlu1 %v3135_v10, %s2848_s27  ;;  %596 = vrot.lane.b32.xlu0 %v3138_v11, %s2848_s27 }
  0xa8   : > { %594 = vrot.lane.b32.xlu1 %v3125_v7, %s2848_s27  ;;  %592 = vrot.lane.b32.xlu0 %v3128_v8, %s2848_s27 }
  0xac   : > { %504 = vrot.lane.b32.xlu1 %v3117_v4, %s2847_s23  ;;  %502 = vrot.lane.b32.xlu0 %v3120_v5, %s2847_s23  ;;  %v3444_v5 = vld [vmem:[%s3104_s14] sm:$0x3f] }
  0xb0   : > { %590 = vrot.lane.b32.xlu1 %v3165_v16, %s2848_s27  ;;  %588 = vrot.lane.b32.xlu0 %v3168_v17, %s2848_s27  ;;  %v3450_v16 = vrot.slane %v3444_v5, %v3224_v32 }
  0xb2   : > { %4798 = vst [vmem:[#allocation29_spill] sm:$0xff] %v3450_v16 }
  0xb4   : > { %666 = vperm.xlu0 %2678, %v660_v19   ;;  %671 = vperm.xlu1 %2679, %v661_v20  }
  0xb8   : > { %681 = vperm.xlu0 %2678, %v663_v22   ;;  %676 = vperm.xlu1 %2679, %v662_v23  }
  0xf6   : > { %v3216_v29 = vpop.permute.xlu1 %498  ;;  %v495_v30 = vpop.permute.xlu0 %494 }
  0xf7   : > { %v529_v33 = vsel %vm520_vm0, %v495_v30, %v3216_v29 }
  0xf8   : > { %v565_v37 = vmul.f32 %v3221_v31, %v529_v33  ;;  %v3305_v33 = vld [vmem:[%s4702_s5] sm:$0xff] }
  0xfa   : > { %v3229_v34 = vpop.permute.xlu1 %500  ;;  %v497_v35 = vpop.permute.xlu0 %496 }
  0xfb   : > { %v530_v36 = vsel %vm520_vm0, %v497_v35, %v3229_v34 }
  0xfc   : > { %v571_v38 = vmul.f32 %v3221_v31, %v530_v36 }
  0xfe   : > { %v517_v40 = vpop.permute.xlu1 %516  ;;  %v515_v41 = vpop.permute.xlu0 %514  ;;  %v2418_v42 = vpack.c.bf16 %v571_v38, %v565_v37 }
  0xff   : > { %v532_v43 = vsel %vm520_vm0, %v517_v40, %v497_v35  ;;  %v531_v44 = vsel %vm520_vm0, %v515_v41, %v495_v30  ;;  %v3310_v35 = vld [vmem:[%s4702_s5 + $0x18] sm:$0xff] }
 0x100   : > { %2419 = vmatprep.subr.bf16.mxu0 %v2418_v42  ;;  %2598 = vmatprep.subr.bf16.mxu1 %v2418_v42  ;;  %v564_v45 = vmul.f32 %v3238_v39, %v531_v44  ;;  %v570_v46 = vmul.f32 %v3238_v39, %v532_v43  ;;  %v3324_v44 = vrot.slane %v3249_v47, %v3277_v59 }
 0x102   : > { %v583_v48 = vpop.permute.xlu1 %582  ;;  %v581_v49 = vpop.permute.xlu0 %580  ;;  %v2420_v50 = vpack.c.bf16 %v570_v46, %v564_v45  ;;  %4792 = vst [vmem:[#allocation23_spill] sm:$0xff] %v3324_v44  ;;  %v3330_v45 = vld [vmem:[%s4702_s5 + $0x8] sm:$0xff] }
 0x104   : > { %2421 = vmatpush1.bf16.msra.mxu0 %v2420_v50  ;;  %2601 = vmatpush1.bf16.msra.mxu1 %v2420_v50 }
 0x105   : > { %2423 = vmatprep.subr.bf16.mxu0 %v3140_v12  ;;  %2599 = vmatprep.subr.bf16.mxu1 %v3140_v12  ;;  %v3290_v12 = vsub.s32 4, %v3204_v25 }
 0x106   : > { %v3258_v52 = vpop.permute.xlu1 %586  ;;  %v3260_v53 = vpop.permute.xlu0 %584 }
 0x107   : > { %v608_v54 = vsel %vm600_vm1, %v583_v48, %v3258_v52  ;;  %v607_v55 = vsel %vm600_vm1, %v581_v49, %v3260_v53  ;;  %4791 = vst [vmem:[#allocation22_spill] sm:$0xff] %v3290_v12  ;;  %v3300_v30 = vrot.slane %v3214_v28, %v3290_v12 }
 0x108   : > { %v651_v56 = vmul.f32 %v3254_v51, %v608_v54  ;;  %v645_v57 = vmul.f32 %v3254_v51, %v607_v55  ;;  %2425 = vmatpush1.bf16.msra.mxu0 %v3142_v13  ;;  %2602 = vmatpush1.bf16.msra.mxu1 %v3142_v13  ;;  %v3340_v55 = vsub.s32 2, %v3204_v25 }
 0x10a   : > { %v579_v60 = vpop.permute.xlu1 %578  ;;  %v577_v61 = vpop.permute.xlu0 %576  ;;  %v2426_v62 = vpack.c.bf16 %v651_v56, %v645_v57  ;;  %4793 = vst [vmem:[#allocation24_spill] sm:$0xff] %v3340_v55 }
 0x10b   : > { %v610_v63 = vsel %vm600_vm1, %v579_v60, %v583_v48  ;;  %v609_v0 = vsel %vm600_vm1, %v577_v61, %v581_v49 }
 0x10c   : > { %v650_v1 = vmul.f32 %v3272_v58, %v610_v63  ;;  %v644_v2 = vmul.f32 %v3272_v58, %v609_v0  ;;  %2427 = vmatprep.subr.bf16.mxu0 %v2426_v62  ;;  %2600 = vmatprep.subr.bf16.mxu1 %v2426_v62  ;;  %v3346_v62 = vrot.slane %v3249_v47, %v3290_v12 }
 0x10e   : > { %v513_v13 = vpop.permute.xlu1 %512  ;;  %v511_v19 = vpop.permute.xlu0 %510  ;;  %v2428_v20 = vpack.c.bf16 %v650_v1, %v644_v2  ;;  %4794 = vst [vmem:[#allocation25_spill] sm:$0xff] %v3346_v62 }
 0x10f   : > { %v522_v21 = vsel %vm520_vm0, %v513_v13, %v517_v40  ;;  %v521_v22 = vsel %vm520_vm0, %v511_v19, %v515_v41 }
 0x110   : > { %v575_v23 = vmul.f32 %v3287_v3, %v522_v21  ;;  %v569_v24 = vmul.f32 %v3287_v3, %v521_v22  ;;  %2429 = vmatpush1.bf16.msra.mxu0 %v2428_v20  ;;  %2603 = vmatpush1.bf16.msra.mxu1 %v2428_v20 }
 0x112   : > { %v509_v36 = vpop.permute.xlu1 %508  ;;  %v507_v37 = vpop.permute.xlu0 %506  ;;  %v2442_v38 = vpack.c.bf16 %v575_v23, %v569_v24 }
 0x113   : > { %v524_v40 = vsel %vm520_vm0, %v509_v36, %v513_v13  ;;  %v523_v41 = vsel %vm520_vm0, %v507_v37, %v511_v19  ;;  %2376 = vmatmul.mubr.msk.f32.vlgmr.msra.gmra.mrb[0].mxu0 %vm684_vm2, %v3305_v33  ;;  %2379 = vmatmul.mubr.msk.f32.vlgmr.msra.gmra.mrb[0].mxu1 %vm684_vm2, %v3310_v35  ;;  %v3365_v19 = vrot.slane %v3214_v28, %v3340_v55 }
 0x114   : > { %v574_v42 = vmul.f32 %v3300_v30, %v524_v40  ;;  %v568_v43 = vmul.f32 %v3300_v30, %v523_v41  ;;  %2443 = vmatprep.subr.bf16.mxu0 %v2442_v38  ;;  %767 = vmatprep.mubr.f32.mxu0 %v4722_v14 }
 0x115   : > { %850 = vmatprep.mubr.f32.mxu1 %v4722_v14 }
 0x116   : > { %v2444_v46 = vpack.c.bf16 %v574_v42, %v568_v43  ;;  %v599_v48 = vpop.permute.xlu1 %598  ;;  %v597_v49 = vpop.permute.xlu0 %596 }
 0x117   : > { %v612_v50 = vsel %vm600_vm1, %v599_v48, %v579_v60  ;;  %v611_v54 = vsel %vm600_vm1, %v597_v49, %v577_v61  ;;  %2377 = vmatmul.mubr.msk.f32.gmra.mrb[2].mxu0 %vm684_vm2, %v3330_v45  ;;  %v658_v60 = vld [vmem:[%s4702_s5 + $0x10] sm:$0xff]  ;;  %v3353_v61 = vsub.s32 3, %v3204_v25 }
 0x118   : > { %v655_v56 = vmul.f32 %v3324_v44, %v612_v50  ;;  %v649_v57 = vmul.f32 %v3324_v44, %v611_v54  ;;  %2445 = vmatpush1.bf16.msra.mxu0 %v2444_v46  ;;  %773 = vmatprep.mubr.f32.mxu0 %v4722_v14 }
 0x119   : > { %4795 = vst [vmem:[#allocation26_spill] sm:$0xff] %v3353_v61  ;;  %2447 = vmatprep.subr.bf16.mxu0 %v2446_v15  ;;  %v3374_v11 = vrot.slane %v3214_v28, %v3353_v61  ;;  %v3379_v22 = vrot.slane %v3249_v47, %v3353_v61 }
 0x11a   : > { %v595_v63 = vpop.permute.xlu1 %594  ;;  %v593_v0 = vpop.permute.xlu0 %592  ;;  %v2450_v1 = vpack.c.bf16 %v655_v56, %v649_v57 }
 0x11b   : > { %v602_v2 = vsel %vm600_vm1, %v595_v63, %v599_v48  ;;  %v601_v13 = vsel %vm600_vm1, %v593_v0, %v597_v49  ;;  %2378 = vmatmul.mubr.msk.f32.gmra.mrb[4].mxu0 %vm684_vm2, %v658_v60  ;;  %4796 = vst [vmem:[#allocation27_spill] sm:$0xff] %v3379_v22 }
 0x11c   : > { %v654_v25 = vmul.f32 %v3346_v62, %v602_v2  ;;  %v648_v10 = vmul.f32 %v3346_v62, %v601_v13  ;;  %2449 = vmatpush1.bf16.msra.mxu0 %v2448_v9  ;;  %939 = vmatprep.mubr.f32.mxu0 %v4722_v14 }
 0x11d   : > { %2451 = vmatprep.subr.bf16.mxu0 %v2450_v1 }
 0x11e   : > { %v2452_v15 = vpack.c.bf16 %v654_v25, %v648_v10  ;;  %v505_v20 = vpop.permute.xlu1 %504  ;;  %v503_v21 = vpop.permute.xlu0 %502 }
 0x11f   : > { %v526_v23 = vsel %vm520_vm0, %v505_v20, %v509_v36  ;;  %v528_v7 = vsel %vm520_vm0, %v3229_v34, %v505_v20  ;;  %v525_v8 = vsel %vm520_vm0, %v503_v21, %v507_v37  ;;  %v527_v9 = vsel %vm520_vm0, %v3216_v29, %v503_v21 }
 0x120   : > { %v572_v28 = vmul.f32 %v3365_v19, %v528_v7  ;;  %v573_v24 = vmul.f32 %v3374_v11, %v526_v23  ;;  %v566_v38 = vmul.f32 %v3365_v19, %v527_v9  ;;  %v567_v40 = vmul.f32 %v3374_v11, %v525_v8  ;;  %2453 = vmatpush1.bf16.msra.mxu0 %v2452_v15 }
 0x121   : > { %v3397_v37 = vrot.slane %v3249_v47, %v3340_v55 }
 0x122   : > { %v2432_v36 = vpack.c.bf16 %v572_v28, %v566_v38  ;;  %v591_v41 = vpop.permute.xlu1 %590  ;;  %v589_v42 = vpop.permute.xlu0 %588  ;;  %v2430_v34 = vpack.c.bf16 %v573_v24, %v567_v40 }
 0x123   : > { %4797 = vst [vmem:[#allocation28_spill] sm:$0xff] %v3397_v37  ;;  %v604_v29 = vsel %vm600_vm1, %v591_v41, %v595_v63  ;;  %v603_v43 = vsel %vm600_vm1, %v589_v42, %v593_v0  ;;  %2384 = vmatmul.mubr.msk.f32.vlgmr.msra.gmra.mrb[6].mxu0 %vm684_vm2, %v3305_v33  ;;  %v606_v46 = vsel %vm600_vm1, %v3258_v52, %v591_v41 }
 0x124   : > { %v653_v48 = vmul.f32 %v3379_v22, %v604_v29  ;;  %v605_v47 = vsel %vm600_vm1, %v3260_v53, %v589_v42  ;;  %v647_v49 = vmul.f32 %v3379_v22, %v603_v43  ;;  %2431 = vmatprep.subr.bf16.mxu1 %v2430_v34  ;;  %945 = vmatprep.mubr.f32.mxu0 %v4722_v14 }
 0x125   : > { %2433 = vmatpush1.bf16.msra.mxu1 %v2432_v36  ;;  %v652_v50 = vmul.f32 %v3397_v37, %v606_v46  ;;  %v646_v52 = vmul.f32 %v3397_v37, %v605_v47  ;;  %v3459_v63 = vrot.slane %v3444_v5, %v3209_v27 }
 0x126   : > { %2435 = vmatprep.subr.bf16.mxu1 %v2434_v18  ;;  %v2438_v54 = vpack.c.bf16 %v653_v48, %v647_v49 }
 0x127   : > { %2385 = vmatmul.mubr.msk.f32.gmra.mrb[8].mxu0 %vm684_vm2, %v3330_v45  ;;  %v2440_v53 = vpack.c.bf16 %v652_v50, %v646_v52  ;;  %4799 = vst [vmem:[#allocation30_spill] sm:$0xff] %v3459_v63 }
 0x128   : > { %951 = vmatprep.mubr.f32.mxu0 %v4722_v14 }
 0x129   : > { %2437 = vmatpush1.bf16.msra.mxu1 %v2436_v6 }
 0x12a   : > { %2439 = vmatprep.subr.bf16.mxu1 %v2438_v54 }
 0x12b   : > { %2386 = vmatmul.mubr.msk.f32.gmra.mrb[10].mxu0 %vm684_vm2, %v658_v60 }
 0x12c   : > { %957 = vmatprep.mubr.f32.mxu0 %v4722_v14 }
 0x12d   : > { %2441 = vmatpush1.bf16.msra.mxu1 %v2440_v53 }
 0x12f   : > { %2387 = vmatmul.mubr.msk.f32.gmra.mrb[12].mxu0 %vm684_vm2, %v3310_v35 }
 0x130   : > { %2380 = vmatmul.mubr.msk.f32.vlgmr.msra.gmra.mrb[2].mxu1 %vm684_vm2, %v3305_v33  ;;  %1429 = vmatprep.mubr.f32.mxu0 %v4722_v14 }
 0x131   : > { %856 = vmatprep.mubr.f32.mxu1 %v4722_v14 }
 0x133   : > { %v3441_v4 = vpop.permute.xlu0 %666  ;;  %v3452_v17 = vpop.permute.xlu1 %671 }
 0x134   : > { %2381 = vmatmul.mubr.msk.f32.gmra.mrb[4].mxu1 %vm684_vm2, %v3330_v45 }
 0x135   : > { %862 = vmatprep.mubr.f32.mxu1 %v4722_v14 }
 0x137   : > { %v3446_v6 = vpop.permute.xlu0 %681  ;;  %v3471_v7 = vpop.permute.xlu1 %676 }
 0x138   : > { %2382 = vmatmul.mubr.msk.f32.gmra.mrb[6].mxu1 %vm684_vm2, %v658_v60 }
 0x139   : > { %868 = vmatprep.mubr.f32.mxu1 %v4722_v14 }
 0x13c   : > { %2383 = vmatmul.mubr.msk.f32.gmra.mrb[8].mxu1 %vm684_vm2, %v3310_v35 }
 0x13d   : > { %1340 = vmatprep.mubr.f32.mxu1 %v4722_v14 }
 0x1e6   : > { %v763_v18 = vpop.f32.mrb[0].mxu0  ;;  %v781_v33 = vpop.f32.mrb[0].mxu1 }
 0x1e7   : > { %v764_v45 = vadd.f32 %v763_v18, %v3441_v4  ;;  %v782_v35 = vadd.f32 %v781_v33, %v3446_v6  ;;  %v765_v56 = vpop.f32.mrb[1].mxu0  ;;  %v783_v57 = vpop.f32.mrb[1].mxu1  ;;  %v3515_v33 = vrot.slane %v3444_v5, %v3290_v12 }
 0x1e8   : > { %v766_v60 = vadd.f32 %v765_v56, %v3441_v4  ;;  %v784_v10 = vadd.f32 %v783_v57, %v3446_v6  ;;  %v3520_v56 = vrot.slane %v3444_v5, %v3277_v59 }
 0x1e9   : > { %v995_v0 = vmul.f32 %v3450_v16, %v764_v45  ;;  %v1013_v1 = vmul.f32 %v3450_v16, %v782_v35  ;;  %4800 = vst [vmem:[#allocation31_spill] sm:$0xff] %v3515_v33 }
 0x1ea   : > { %v769_v2 = vpop.f32.mrb[2].mxu0  ;;  %v996_v21 = vmul.f32 %v3459_v63, %v766_v60  ;;  %v1014_v24 = vmul.f32 %v3459_v63, %v784_v10  ;;  %4801 = vst [vmem:[#allocation32_spill] sm:$0xff] %v3520_v56 }
 0x1eb   : > { %v3463_v13 = vmax.f32 %v995_v0, 0.0  ;;  %v3465_v25 = vmax.f32 %v1013_v1, 0.0  ;;  %v770_v15 = vadd.f32 %v769_v2, %v3452_v17  ;;  %v771_v20 = vpop.f32.mrb[3].mxu0 }
 0x1ec   : > { %v772_v23 = vadd.f32 %v771_v20, %v3452_v17  ;;  %v3483_v41 = vmax.f32 %v996_v21, 0.0  ;;  %v3498_v47 = vmax.f32 %v1014_v24, 0.0 }
 0x1ed   : > { %v1001_v8 = vmul.f32 %v3450_v16, %v770_v15  ;;  %1049 = vrot.lane.b32.xlu0 %v3465_v25, %s2847_s23  ;;  %1043 = vrot.lane.b32.xlu1 %v3463_v13, %s2847_s23 }
 0x1ee   : > { %v1002_v9 = vmul.f32 %v3459_v63, %v772_v23  ;;  %v775_v28 = vpop.f32.mrb[4].mxu0 }
 0x1ef   : > { %v3480_v38 = vmax.f32 %v1001_v8, 0.0  ;;  %v776_v40 = vadd.f32 %v775_v28, %v3471_v7  ;;  %v777_v36 = vpop.f32.mrb[5].mxu0 }
 0x1f0   : > { %v3485_v42 = vmax.f32 %v1002_v9, 0.0  ;;  %v778_v34 = vadd.f32 %v777_v36, %v3471_v7 }
 0x1f1   : > { %v1007_v29 = vmul.f32 %v3450_v16, %v776_v40  ;;  %1145 = vrot.lane.b32.xlu0 %v3465_v25, %s2848_s27  ;;  %1139 = vrot.lane.b32.xlu1 %v3463_v13, %s2848_s27 }
 0x1f2   : > { %v1008_v46 = vmul.f32 %v3459_v63, %v778_v34 }
 0x1f3   : > { %v3500_v49 = vmax.f32 %v1007_v29, 0.0 }
 0x1f4   : > { %v3502_v50 = vmax.f32 %v1008_v46, 0.0 }
 0x1f5   : > { %1057 = vrot.lane.b32.xlu0 %v3498_v47, %s2847_s23  ;;  %1051 = vrot.lane.b32.xlu1 %v3483_v41, %s2847_s23 }
 0x1f6   : > { %v941_v54 = vpop.f32.mrb[6].mxu0 }
 0x1f7   : > { %v942_v18 = vadd.f32 %v941_v54, %v3441_v4  ;;  %v943_v45 = vpop.f32.mrb[7].mxu0 }
 0x1f8   : > { %v944_v35 = vadd.f32 %v943_v45, %v3441_v4 }
 0x1f9   : > { %1153 = vrot.lane.b32.xlu0 %v3498_v47, %s2848_s27  ;;  %1147 = vrot.lane.b32.xlu1 %v3483_v41, %s2848_s27  ;;  %v999_v60 = vmul.f32 %v3515_v33, %v942_v18 }
 0x1fa   : > { %v947_v57 = vpop.f32.mrb[8].mxu0  ;;  %v1000_v2 = vmul.f32 %v3520_v56, %v944_v35  ;;  %v3558_v35 = vrot.slane %v3444_v5, %v3340_v55 }
 0x1fb   : > { %v948_v0 = vadd.f32 %v947_v57, %v3452_v17  ;;  %v949_v1 = vpop.f32.mrb[9].mxu0  ;;  %v3536_v23 = vmax.f32 %v999_v60, 0.0 }
 0x1fc   : > { %v950_v10 = vadd.f32 %v949_v1, %v3452_v17  ;;  %v3541_v24 = vmax.f32 %v1000_v2, 0.0  ;;  %4802 = vst [vmem:[#allocation33_spill] sm:$0xff] %v3558_v35 }
 0x1fd   : > { %v1005_v15 = vmul.f32 %v3515_v33, %v948_v0  ;;  %1045 = vrot.lane.b32.xlu0 %v3480_v38, %s2847_s23  ;;  %1047 = vrot.lane.b32.xlu1 %v3500_v49, %s2847_s23 }
 0x1fe   : > { %v1006_v20 = vmul.f32 %v3520_v56, %v950_v10  ;;  %v953_v21 = vpop.f32.mrb[10].mxu0 }
 0x1ff   : > { %v3538_v8 = vmax.f32 %v1005_v15, 0.0  ;;  %v954_v9 = vadd.f32 %v953_v21, %v3471_v7  ;;  %v955_v28 = vpop.f32.mrb[11].mxu0 }
 0x200   : > { %v3543_v40 = vmax.f32 %v1006_v20, 0.0  ;;  %v956_v36 = vadd.f32 %v955_v28, %v3471_v7  ;;  %v3567_v20 = vrot.slane %v3444_v5, %v3353_v61 }
 0x201   : > { %1141 = vrot.lane.b32.xlu0 %v3480_v38, %s2848_s27  ;;  %1143 = vrot.lane.b32.xlu1 %v3500_v49, %s2848_s27  ;;  %v1011_v54 = vmul.f32 %v3515_v33, %v954_v9 }
 0x202   : > { %v959_v29 = vpop.f32.mrb[12].mxu0  ;;  %v1012_v60 = vmul.f32 %v3520_v56, %v956_v36  ;;  %4803 = vst [vmem:[#allocation34_spill] sm:$0xff] %v3567_v20 }
 0x203   : > { %v960_v18 = vadd.f32 %v959_v29, %v3446_v6  ;;  %v852_v45 = vpop.f32.mrb[2].mxu1  ;;  %v961_v57 = vpop.f32.mrb[13].mxu0  ;;  %v3574_v9 = vmax.f32 %v1011_v54, 0.0 }
 0x204   : > { %v853_v0 = vadd.f32 %v852_v45, %v3441_v4  ;;  %v962_v1 = vadd.f32 %v961_v57, %v3446_v6  ;;  %v854_v2 = vpop.f32.mrb[3].mxu1 }
 0x205   : > { %v1017_v10 = vmul.f32 %v3515_v33, %v960_v18  ;;  %v855_v15 = vadd.f32 %v854_v2, %v3441_v4  ;;  %1053 = vrot.lane.b32.xlu0 %v3485_v42, %s2847_s23  ;;  %1055 = vrot.lane.b32.xlu1 %v3502_v50, %s2847_s23  ;;  %v3579_v4 = vmax.f32 %v1012_v60, 0.0 }
 0x206   : > { %v1018_v21 = vmul.f32 %v3520_v56, %v962_v1  ;;  %v997_v36 = vmul.f32 %v3558_v35, %v853_v0 }
 0x207   : > { %v3576_v28 = vmax.f32 %v1017_v10, 0.0  ;;  %v858_v29 = vpop.f32.mrb[4].mxu1  ;;  %v998_v57 = vmul.f32 %v3567_v20, %v855_v15 }
 0x208   : > { %v3581_v18 = vmax.f32 %v1018_v21, 0.0  ;;  %v859_v5 = vadd.f32 %v858_v29, %v3452_v17  ;;  %v860_v45 = vpop.f32.mrb[5].mxu1  ;;  %v3595_v1 = vmax.f32 %v997_v36, 0.0 }
 0x209   : > { %v861_v2 = vadd.f32 %v860_v45, %v3452_v17  ;;  %1149 = vrot.lane.b32.xlu0 %v3485_v42, %s2848_s27  ;;  %1151 = vrot.lane.b32.xlu1 %v3502_v50, %s2848_s27  ;;  %v3601_v45 = vmax.f32 %v998_v57, 0.0 }
 0x20a   : > { %v1003_v60 = vmul.f32 %v3558_v35, %v859_v5 }
 0x20b   : > { %v1004_v10 = vmul.f32 %v3567_v20, %v861_v2  ;;  %v864_v15 = vpop.f32.mrb[6].mxu1 }
 0x20c   : > { %v3598_v17 = vmax.f32 %v1003_v60, 0.0  ;;  %v865_v21 = vadd.f32 %v864_v15, %v3471_v7  ;;  %v866_v29 = vpop.f32.mrb[7].mxu1 }
 0x20d   : > { %v3603_v34 = vmax.f32 %v1004_v10, 0.0  ;;  %v867_v54 = vadd.f32 %v866_v29, %v3471_v7  ;;  %1155 = vrot.lane.b32.xlu1 %v3595_v1, %s2848_s27 }
 0x20e   : > { %1157 = vrot.lane.b32.xlu0 %v3598_v17, %s2848_s27  ;;  %v1009_v5 = vmul.f32 %v3558_v35, %v865_v21 }
 0x20f   : > { %v870_v2 = vpop.f32.mrb[8].mxu1  ;;  %v1010_v7 = vmul.f32 %v3567_v20, %v867_v54 }
 0x210   : > { %v871_v60 = vadd.f32 %v870_v2, %v3446_v6  ;;  %v872_v10 = vpop.f32.mrb[9].mxu1  ;;  %v3623_v21 = vmax.f32 %v1009_v5, 0.0  ;;  %v1240_v5 = vld [vmem:[%s4705_s8 + $0x8] sm:$0xff] }
 0x211   : > { %v873_v15 = vadd.f32 %v872_v10, %v3446_v6  ;;  %1083 = vrot.lane.b32.xlu1 %v3541_v24, %s2847_s23  ;;  %v3628_v2 = vmax.f32 %v1010_v7, 0.0  ;;  %v1242_v10 = vld [vmem:[%s4705_s8 + $0x18] sm:$0xff] }
 0x212   : > { %v1015_v29 = vmul.f32 %v3558_v35, %v871_v60  ;;  %1085 = vrot.lane.b32.xlu0 %v3543_v40, %s2847_s23  ;;  %4804 = vst [vmem:[#allocation35_spill] sm:$0xff] %v3623_v21  ;;  %v1241_v60 = vld [vmem:[%s4705_s8 + $0x10] sm:$0xff] }
 0x213   : > { %v1016_v36 = vmul.f32 %v3567_v20, %v873_v15  ;;  %4806 = vst [vmem:[#allocation37_spill] sm:$0xff] %v3628_v2 }
 0x214   : > { %v3626_v57 = vmax.f32 %v1015_v29, 0.0 }
 0x215   : > { %v3630_v0 = vmax.f32 %v1016_v36, 0.0  ;;  %1159 = vrot.lane.b32.xlu1 %v3623_v21, %s2848_s27  ;;  %v1239_v36 = vld [vmem:[%s4705_s8] sm:$0xff] }
 0x216   : > { %4805 = vst [vmem:[#allocation36_spill] sm:$0xff] %v3626_v57  ;;  %1161 = vrot.lane.b32.xlu0 %v3626_v57, %s2848_s27 }
 0x217   : > { %4807 = vst [vmem:[#allocation38_spill] sm:$0xff] %v3630_v0 }
 0x219   : > { %1087 = vrot.lane.b32.xlu1 %v3579_v4, %s2847_s23 }
 0x21a   : > { %1089 = vrot.lane.b32.xlu0 %v3581_v18, %s2847_s23 }
 0x21d   : > { %1075 = vrot.lane.b32.xlu1 %v3536_v23, %s2847_s23 }
 0x21e   : > { %1077 = vrot.lane.b32.xlu0 %v3538_v8, %s2847_s23 }
 0x221   : > { %1067 = vrot.lane.b32.xlu1 %v3601_v45, %s2847_s23 }
 0x222   : > { %1069 = vrot.lane.b32.xlu0 %v3603_v34, %s2847_s23 }
 0x225   : > { %1079 = vrot.lane.b32.xlu1 %v3574_v9, %s2847_s23 }
 0x226   : > { %1081 = vrot.lane.b32.xlu0 %v3576_v28, %s2847_s23 }
 0x229   : > { %1071 = vrot.lane.b32.xlu1 %v3628_v2, %s2847_s23 }
 0x22a   : > { %1061 = vrot.lane.b32.xlu0 %v3598_v17, %s2847_s23 }
 0x22d   : > { %1059 = vrot.lane.b32.xlu1 %v3595_v1, %s2847_s23 }
 0x22e   : > { %1181 = vrot.lane.b32.xlu0 %v3543_v40, %s2848_s27 }
 0x231   : > { %1179 = vrot.lane.b32.xlu1 %v3541_v24, %s2848_s27 }
 0x232   : > { %1073 = vrot.lane.b32.xlu0 %v3630_v0, %s2847_s23 }
 0x235   : > { %1171 = vrot.lane.b32.xlu1 %v3536_v23, %s2848_s27 }
 0x236   : > { %1173 = vrot.lane.b32.xlu0 %v3538_v8, %s2848_s27 }
 0x239   : > { %1063 = vrot.lane.b32.xlu1 %v3623_v21, %s2847_s23 }
 0x23a   : > { %1065 = vrot.lane.b32.xlu0 %v3626_v57, %s2847_s23 }
 0x23d   : > { %1183 = vrot.lane.b32.xlu1 %v3579_v4, %s2848_s27 }
 0x23e   : > { %1185 = vrot.lane.b32.xlu0 %v3581_v18, %s2848_s27 }
 0x241   : > { %1175 = vrot.lane.b32.xlu1 %v3574_v9, %s2848_s27 }
 0x242   : > { %1177 = vrot.lane.b32.xlu0 %v3576_v28, %s2848_s27 }
 0x245   : > { %1163 = vrot.lane.b32.xlu1 %v3601_v45, %s2848_s27 }
 0x246   : > { %1165 = vrot.lane.b32.xlu0 %v3603_v34, %s2848_s27 }
 0x249   : > { %1167 = vrot.lane.b32.xlu1 %v3628_v2, %s2848_s27 }
 0x24a   : > { %1169 = vrot.lane.b32.xlu0 %v3630_v0, %s2848_s27 }
 0x24d   : > { %1245 = vperm.xlu1 %2679, %v1239_v36  }
 0x24e   : > { %1250 = vperm.xlu0 %2678, %v1240_v5  }
 0x251   : > { %1255 = vperm.xlu1 %2679, %v1241_v60  }
 0x252   : > { %1260 = vperm.xlu0 %2678, %v1242_v10  }
 0x25f   : > { %v1050_v7 = vpop.permute.xlu0 %1049  ;;  %v1044_v15 = vpop.permute.xlu1 %1043 }
 0x263   : > { %v3704_v29 = vpop.permute.xlu0 %1145  ;;  %v3706_v6 = vpop.permute.xlu1 %1139 }
 0x267   : > { %v3708_v54 = vpop.permute.xlu0 %1057  ;;  %v3710_v36 = vpop.permute.xlu1 %1051 }
 0x268   : > { %v1107_v60 = vsel %vm520_vm0, %v1044_v15, %v3710_v36  ;;  %v1110_v63 = vsel %vm520_vm0, %v1050_v7, %v3708_v54 }
 0x269   : > { %v1116_v12 = vmul.f32 %v1107_v60, %v3221_v31  ;;  %v1134_v21 = vmul.f32 %v1110_v63, %v3221_v31 }
 0x26b   : > { %v3712_v5 = vpop.permute.xlu0 %1153  ;;  %v1148_v46 = vpop.permute.xlu1 %1147 }
 0x26f   : > { %v1046_v14 = vpop.permute.xlu0 %1045  ;;  %v1048_v52 = vpop.permute.xlu1 %1047 }
 0x273   : > { %v3714_v53 = vpop.permute.xlu0 %1141  ;;  %v3716_v43 = vpop.permute.xlu1 %1143 }
 0x277   : > { %v3721_v10 = vpop.permute.xlu0 %1053  ;;  %v3723_v48 = vpop.permute.xlu1 %1055 }
 0x278   : > { %v1108_v59 = vsel %vm520_vm0, %v1046_v14, %v3721_v10  ;;  %v1109_v20 = vsel %vm520_vm0, %v1048_v52, %v3723_v48 }
 0x279   : > { %v1122_v61 = vmul.f32 %v1108_v59, %v3221_v31 }
 0x27b   : > { %v1150_v55 = vpop.permute.xlu0 %1149  ;;  %v1152_v27 = vpop.permute.xlu1 %1151  ;;  %v2454_v32 = vpack.c.bf16 %v1122_v61, %v1116_v12  ;;  %v1128_v12 = vmul.f32 %v1109_v20, %v3221_v31 }
 0x27d   : > { %2455 = vmatprep.subr.bf16.mxu1 %v2454_v32  ;;  %v2458_v2 = vpack.c.bf16 %v1134_v21, %v1128_v12 }
 0x27f   : > { %v3730_v33 = vpop.permute.xlu1 %1155 }
 0x280   : > { %v3732_v56 = vpop.permute.xlu0 %1157 }
 0x281   : > { %v1200_v21 = vsel %vm600_vm1, %v1150_v55, %v3732_v56 }
 0x283   : > { %v1084_v35 = vpop.permute.xlu1 %1083 }
 0x284   : > { %v1111_v59 = vsel %vm520_vm0, %v1084_v35, %v1044_v15  ;;  %v1086_v60 = vpop.permute.xlu0 %1085 }
 0x285   : > { %v1115_v32 = vmul.f32 %v1111_v59, %v3238_v39  ;;  %v1112_v61 = vsel %vm520_vm0, %v1086_v60, %v1046_v14 }
 0x286   : > { %v1121_v16 = vmul.f32 %v1112_v61, %v3238_v39 }
 0x287   : > { %v3748_v57 = vpop.permute.xlu1 %1159 }
 0x288   : > { %v2456_v22 = vpack.c.bf16 %v1121_v16, %v1115_v32  ;;  %v3750_v37 = vpop.permute.xlu0 %1161  ;;  %v1218_v32 = vmul.f32 %v1200_v21, %v3254_v51 }
 0x28a   : > { %2457 = vmatpush1.bf16.msra.mxu1 %v2456_v22  ;;  %v1199_v22 = vsel %vm600_vm1, %v1148_v46, %v3730_v33 }
 0x28b   : > { %2459 = vmatprep.subr.bf16.mxu1 %v2458_v2  ;;  %v1088_v15 = vpop.permute.xlu1 %1087  ;;  %v1212_v12 = vmul.f32 %v1199_v22, %v3254_v51  ;;  %v1205_v22 = vsel %vm600_vm1, %v3716_v43, %v1152_v27 }
 0x28c   : > { %v1113_v20 = vsel %vm520_vm0, %v1088_v15, %v1048_v52  ;;  %v1090_v59 = vpop.permute.xlu0 %1089  ;;  %v4808_v52 = vpack.c.bf16 %v3485_v42, %v3483_v41  ;;  %v4809_v41 = vpack.c.bf16 %v3480_v38, %v3463_v13 }
 0x28d   : > { %v1127_v0 = vmul.f32 %v1113_v20, %v3238_v39  ;;  %v1114_v14 = vsel %vm520_vm0, %v1090_v59, %v1050_v7  ;;  %v1201_v20 = vsel %vm600_vm1, %v1152_v27, %v3748_v57  ;;  %v4811_v27 = vpack.c.bf16 %v3465_v25, %v3500_v49 }
 0x28e   : > { %v1133_v63 = vmul.f32 %v1114_v14, %v3238_v39  ;;  %v4810_v14 = vpack.c.bf16 %v3498_v47, %v3502_v50  ;;  %v1206_v47 = vsel %vm600_vm1, %v3704_v29, %v3712_v5 }
 0x28f   : > { %v1076_v61 = vpop.permute.xlu1 %1075  ;;  %v1229_v25 = vmul.f32 %v1206_v47, %v3272_v58 }
 0x290   : > { %v2460_v31 = vpack.c.bf16 %v1133_v63, %v1127_v0  ;;  %v1078_v16 = vpop.permute.xlu0 %1077  ;;  %v1204_v0 = vsel %vm600_vm1, %v3714_v53, %v1150_v55  ;;  %v1203_v55 = vsel %vm600_vm1, %v3706_v6, %v1148_v46  ;;  %v1091_v21 = vsel %vm520_vm0, %v1076_v61, %v1084_v35 }
 0x291   : > { %v1217_v63 = vmul.f32 %v1204_v0, %v3272_v58  ;;  %v1092_v13 = vsel %vm520_vm0, %v1078_v16, %v1086_v60  ;;  %v1224_v46 = vmul.f32 %v1201_v20, %v3254_v51  ;;  %v1211_v50 = vmul.f32 %v1203_v55, %v3272_v58 }
 0x292   : > { %2461 = vmatpush1.bf16.msra.mxu1 %v2460_v31  ;;  %v1202_v31 = vsel %vm600_vm1, %v3712_v5, %v3750_v37  ;;  %v1223_v35 = vmul.f32 %v1205_v22, %v3272_v58  ;;  %v1120_v60 = vmul.f32 %v1091_v21, %v3287_v3  ;;  %v1126_v0 = vmul.f32 %v1092_v13, %v3287_v3 }
 0x293   : > { %2463 = vmatprep.subr.bf16.mxu1 %v4808_v52  ;;  %v1068_v2 = vpop.permute.xlu1 %1067  ;;  %v1230_v52 = vmul.f32 %v1202_v31, %v3254_v51 }
 0x294   : > { %v1070_v7 = vpop.permute.xlu0 %1069 }
 0x295   : > { %v1096_v5 = vsel %vm520_vm0, %v1070_v7, %v1078_v16 }
 0x296   : > { %2465 = vmatpush1.bf16.msra.mxu1 %v4809_v41  ;;  %v2470_v41 = vpack.c.bf16 %v1218_v32, %v1212_v12  ;;  %v2472_v12 = vpack.c.bf16 %v1217_v63, %v1211_v50  ;;  %v1095_v32 = vsel %vm520_vm0, %v1068_v2, %v1076_v61  ;;  %v2476_v63 = vpack.c.bf16 %v1229_v25, %v1223_v35  ;;  %v3841_v35 = vld [vmem:[%s4704_s7] sm:$0xff] }
 0x297   : > { %v1080_v42 = vpop.permute.xlu1 %1079  ;;  %2467 = vmatprep.subr.bf16.mxu1 %v4810_v14  ;;  %v2474_v14 = vpack.c.bf16 %v1230_v52, %v1224_v46  ;;  %v1119_v16 = vmul.f32 %v1095_v32, %v3300_v30  ;;  %v1125_v21 = vmul.f32 %v1096_v5, %v3300_v30 }
 0x298   : > { %v1082_v38 = vpop.permute.xlu0 %1081  ;;  %v1093_v49 = vsel %vm520_vm0, %v1080_v42, %v1088_v15  ;;  %v2502_v15 = vpack.c.bf16 %v1126_v0, %v1120_v60 }
 0x299   : > { %v1094_v55 = vsel %vm520_vm0, %v1082_v38, %v1090_v59 }
 0x29a   : > { %2469 = vmatpush1.bf16.msra.mxu1 %v4811_v27  ;;  %v1138_v59 = vmul.f32 %v1094_v55, %v3287_v3 }
 0x29b   : > { %v3809_v20 = vpop.permute.xlu1 %1071  ;;  %2471 = vmatprep.subr.bf16.mxu1 %v2470_v41  ;;  %v1132_v41 = vmul.f32 %v1093_v49, %v3287_v3 }
 0x29c   : > { %v1062_v31 = vpop.permute.xlu0 %1061 }
 0x29d   : > { %v1100_v22 = vsel %vm520_vm0, %v1062_v31, %v1070_v7  ;;  %v1104_v61 = vsel %vm520_vm0, %v3721_v10, %v1062_v31  ;;  %v2506_v31 = vpack.c.bf16 %v1138_v59, %v1132_v41 }
 0x29e   : > { %2473 = vmatpush1.bf16.msra.mxu1 %v2472_v12  ;;  %v1123_v52 = vmul.f32 %v1104_v61, %v3365_v19  ;;  %v1124_v47 = vmul.f32 %v1100_v22, %v3374_v11  ;;  %v2504_v12 = vpack.c.bf16 %v1125_v21, %v1119_v16 }
 0x29f   : > { %v1060_v13 = vpop.permute.xlu1 %1059  ;;  %2475 = vmatprep.subr.bf16.mxu1 %v2474_v14 }
 0x2a0   : > { %v1099_v7 = vsel %vm520_vm0, %v1060_v13, %v1068_v2  ;;  %v1103_v10 = vsel %vm520_vm0, %v3710_v36, %v1060_v13  ;;  %v1182_v46 = vpop.permute.xlu0 %1181  ;;  %v1097_v36 = vsel %vm520_vm0, %v3809_v20, %v1080_v42  ;;  %v3855_v42 = vld [vmem:[%s4704_s7 + $0x8] sm:$0xff]  ;;  %v4813_v13 = vpack.c.bf16 %v3543_v40, %v3541_v24 }
 0x2a1   : > { %v1117_v50 = vmul.f32 %v1103_v10, %v3365_v19  ;;  %v1118_v27 = vmul.f32 %v1099_v7, %v3374_v11  ;;  %v1131_v25 = vmul.f32 %v1097_v36, %v3300_v30  ;;  %v1208_v16 = vsel %vm600_vm1, %v1182_v46, %v3714_v53 }
 0x2a2   : > { %2477 = vmatpush1.bf16.msra.mxu1 %v2476_v63  ;;  %v3871_v63 = vld [vmem:[%s4704_s7 + $0x10] sm:$0xff]  ;;  %v4815_v36 = vpack.c.bf16 %v3581_v18, %v3579_v4 }
 0x2a3   : > { %v2480_v2 = vpack.c.bf16 %v1123_v52, %v1117_v50  ;;  %v1180_v60 = vpop.permute.xlu1 %1179  ;;  %2503 = vmatprep.subr.bf16.mxu1 %v2502_v15  ;;  %v2478_v0 = vpack.c.bf16 %v1124_v47, %v1118_v27  ;;  %v3910_v47 = vld [vmem:[%s4704_s7 + $0x18] sm:$0xff] }
 0x2a4   : > { %v1074_v32 = vpop.permute.xlu0 %1073  ;;  %v1207_v14 = vsel %vm600_vm1, %v1180_v60, %v3706_v6 }
 0x2a5   : > { %v1098_v5 = vsel %vm520_vm0, %v1074_v32, %v1082_v38  ;;  %2388 = vmatmul.mubr.msk.f32.vlgmr.msra.gmra.mrb[10].mxu1 %vm1263_vm3, %v3841_v35  ;;  %2479 = vmatprep.subr.bf16.mxu0 %v2478_v0  ;;  %v4812_v38 = vmov 0.0   ;;  %v1216_v6 = vmul.f32 %v1207_v14, %v3324_v44 }
 0x2a6   : > { %v1137_v49 = vmul.f32 %v1098_v5, %v3300_v30  ;;  %2481 = vmatpush1.bf16.msra.mxu0 %v2480_v2  ;;  %2505 = vmatpush1.bf16.msra.mxu1 %v2504_v12  ;;  %v4816_v5 = vpack.c.bf16 %v3576_v28, %v3574_v9 }
 0x2a7   : > { %v3857_v55 = vpop.permute.xlu1 %1171  ;;  %2507 = vmatprep.subr.bf16.mxu1 %v2506_v31  ;;  %1346 = vmatprep.mubr.f32.mxu1 %v4812_v38 }
 0x2a8   : > { %v2508_v22 = vpack.c.bf16 %v1137_v49, %v1131_v25  ;;  %v3863_v61 = vpop.permute.xlu0 %1173  ;;  %v1187_v15 = vsel %vm600_vm1, %v3857_v55, %v1180_v60 }
 0x2a9   : > { %2389 = vmatmul.mubr.msk.f32.gmra.mrb[12].mxu1 %vm1263_vm3, %v3855_v42  ;;  %v1188_v41 = vsel %vm600_vm1, %v3863_v61, %v1182_v46  ;;  %v1215_v50 = vmul.f32 %v1187_v15, %v3346_v62  ;;  %v4819_v15 = vld [vmem:[#allocation38_spill] sm:$0xff] }
 0x2aa   : > { %2509 = vmatpush1.bf16.msra.mxu1 %v2508_v22  ;;  %1352 = vmatprep.mubr.f32.mxu1 %v4812_v38  ;;  %v1221_v2 = vmul.f32 %v1188_v41, %v3346_v62  ;;  %v4820_v41 = vld [vmem:[#allocation37_spill] sm:$0xff] }
 0x2ab   : > { %v1064_v21 = vpop.permute.xlu1 %1063  ;;  %2511 = vmatprep.subr.bf16.mxu1 %v4813_v13 }
 0x2ac   : > { %v1101_v59 = vsel %vm520_vm0, %v1064_v21, %v3809_v20  ;;  %v1105_v53 = vsel %vm520_vm0, %v3723_v48, %v1064_v21  ;;  %v1066_v7 = vpop.permute.xlu0 %1065  ;;  %v4814_v48 = vpack.c.bf16 %v3538_v8, %v3536_v23  ;;  %v2520_v31 = vpack.c.bf16 %v1221_v2, %v1215_v50 }
 0x2ad   : > { %v1129_v24 = vmul.f32 %v1105_v53, %v3365_v19  ;;  %v1130_v40 = vmul.f32 %v1101_v59, %v3374_v11  ;;  %v1102_v10 = vsel %vm520_vm0, %v1066_v7, %v1074_v32  ;;  %v1106_v46 = vsel %vm520_vm0, %v3708_v54, %v1066_v7  ;;  %2390 = vmatmul.mubr.msk.f32.gmra.mrb[14].mxu1 %vm1263_vm3, %v3871_v63  ;;  %v4822_v53 = vld [vmem:[#allocation28_spill] sm:$0xff] }
 0x2ae   : > { %v1135_v20 = vmul.f32 %v1106_v46, %v3365_v19  ;;  %v1136_v52 = vmul.f32 %v1102_v10, %v3374_v11  ;;  %2513 = vmatpush1.bf16.msra.mxu1 %v4814_v48  ;;  %1358 = vmatprep.mubr.f32.mxu1 %v4812_v38  ;;  %v1222_v54 = vmul.f32 %v1208_v16, %v3324_v44  ;;  %v4824_v10 = vld [vmem:[#allocation36_spill] sm:$0xff]  ;;  %v4825_v46 = vld [vmem:[#allocation35_spill] sm:$0xff] }
 0x2af   : > { %v1184_v27 = vpop.permute.xlu1 %1183  ;;  %2515 = vmatprep.subr.bf16.mxu1 %v4815_v36  ;;  %v4818_v16 = vpack.c.bf16 %v3598_v17, %v3595_v1  ;;  %v4821_v59 = vpack.c.bf16 %v4819_v15, %v4820_v41  ;;  %v4823_v1 = vld [vmem:[#allocation27_spill] sm:$0xff] }
 0x2b0   : > { %v2484_v23 = vpack.c.bf16 %v1135_v20, %v1129_v24  ;;  %v1209_v8 = vsel %vm600_vm1, %v1184_v27, %v3716_v43  ;;  %v1186_v60 = vpop.permute.xlu0 %1185  ;;  %v2482_v0 = vpack.c.bf16 %v1136_v52, %v1130_v40  ;;  %v2518_v4 = vpack.c.bf16 %v1222_v54, %v1216_v6 }
 0x2b1   : > { %v1228_v12 = vmul.f32 %v1209_v8, %v3324_v44  ;;  %v1210_v32 = vsel %vm600_vm1, %v1186_v60, %v3704_v29  ;;  %2391 = vmatmul.mubr.msk.f32.gmra.mrb[16].mxu1 %vm1263_vm3, %v3910_v47  ;;  %v4817_v29 = vpack.c.bf16 %v3603_v34, %v3601_v45  ;;  %v4826_v20 = vpack.c.bf16 %v4824_v10, %v4825_v46 }
 0x2b2   : > { %v1234_v18 = vmul.f32 %v1210_v32, %v3324_v44  ;;  %2483 = vmatprep.subr.bf16.mxu0 %v2482_v0  ;;  %2517 = vmatpush1.bf16.msra.mxu1 %v4816_v5 }
 0x2b3   : > { %2485 = vmatpush1.bf16.msra.mxu0 %v2484_v23  ;;  %v1176_v43 = vpop.permute.xlu1 %1175  ;;  %2519 = vmatprep.subr.bf16.mxu1 %v2518_v4  ;;  %v4827_v4 = vld [vmem:[#allocation29_spill] sm:$0xff] }
 0x2b4   : > { %v1189_v25 = vsel %vm600_vm1, %v1176_v43, %v1184_v27  ;;  %v1178_v49 = vpop.permute.xlu0 %1177  ;;  %2487 = vmatprep.subr.bf16.mxu0 %v4817_v29  ;;  %v2522_v14 = vpack.c.bf16 %v1234_v18, %v1228_v12  ;;  %1518 = vmatprep.mubr.f32.mxu1 %v4812_v38 }
 0x2b5   : > { %v1227_v22 = vmul.f32 %v1189_v25, %v3346_v62  ;;  %v1190_v9 = vsel %vm600_vm1, %v1178_v49, %v1186_v60  ;;  %v4828_v25 = vld [vmem:[#allocation30_spill] sm:$0xff] }
 0x2b6   : > { %v1233_v28 = vmul.f32 %v1190_v9, %v3346_v62  ;;  %2521 = vmatpush1.bf16.msra.mxu1 %v2520_v31 }
 0x2b7   : > { %2489 = vmatpush1.bf16.msra.mxu0 %v4818_v16  ;;  %v1164_v6 = vpop.permute.xlu1 %1163  ;;  %2523 = vmatprep.subr.bf16.mxu1 %v2522_v14 }
 0x2b8   : > { %v2524_v21 = vpack.c.bf16 %v1233_v28, %v1227_v22  ;;  %v1191_v34 = vsel %vm600_vm1, %v1164_v6, %v3857_v55  ;;  %v1195_v45 = vsel %vm600_vm1, %v3730_v33, %v1164_v6  ;;  %v1166_v13 = vpop.permute.xlu0 %1165  ;;  %2491 = vmatprep.subr.bf16.mxu0 %v4821_v59 }
 0x2b9   : > { %v1213_v7 = vmul.f32 %v1195_v45, %v4822_v53  ;;  %v1214_v17 = vmul.f32 %v1191_v34, %v4823_v1  ;;  %v1192_v24 = vsel %vm600_vm1, %v1166_v13, %v3863_v61  ;;  %v1196_v55 = vsel %vm600_vm1, %v3732_v56, %v1166_v13 }
 0x2ba   : > { %v1219_v40 = vmul.f32 %v1196_v55, %v4822_v53  ;;  %v1220_v33 = vmul.f32 %v1192_v24, %v4823_v1  ;;  %2525 = vmatpush1.bf16.msra.mxu1 %v2524_v21 }
 0x2bb   : > { %2493 = vmatpush1.bf16.msra.mxu0 %v4826_v20  ;;  %v1168_v52 = vpop.permute.xlu1 %1167 }
 0x2bc   : > { %v2496_v48 = vpack.c.bf16 %v1219_v40, %v1213_v7  ;;  %v1193_v54 = vsel %vm600_vm1, %v1168_v52, %v1176_v43  ;;  %v1197_v61 = vsel %vm600_vm1, %v3748_v57, %v1168_v52  ;;  %v1170_v50 = vpop.permute.xlu0 %1169  ;;  %v2494_v56 = vpack.c.bf16 %v1220_v33, %v1214_v17 }
 0x2bd   : > { %v1225_v27 = vmul.f32 %v1197_v61, %v4822_v53  ;;  %v1226_v36 = vmul.f32 %v1193_v54, %v4823_v1  ;;  %v1194_v2 = vsel %vm600_vm1, %v1170_v50, %v1178_v49  ;;  %v1198_v23 = vsel %vm600_vm1, %v3750_v37, %v1170_v50  ;;  %2396 = vmatmul.mubr.msk.f32.vlgmr.msra.gmra.mrb[18].mxu1 %vm1263_vm3, %v3841_v35 }
 0x2be   : > { %v1231_v8 = vmul.f32 %v1198_v23, %v4822_v53  ;;  %v1232_v57 = vmul.f32 %v1194_v2, %v4823_v1  ;;  %2495 = vmatprep.subr.bf16.mxu0 %v2494_v56  ;;  %1524 = vmatprep.mubr.f32.mxu1 %v4812_v38 }
 0x2bf   : > { %2497 = vmatpush1.bf16.msra.mxu0 %v2496_v48 }
 0x2c0   : > { %v2500_v60 = vpack.c.bf16 %v1231_v8, %v1225_v27  ;;  %v2498_v0 = vpack.c.bf16 %v1232_v57, %v1226_v36 }
 0x2c1   : > { %2397 = vmatmul.mubr.msk.f32.gmra.mrb[20].mxu1 %vm1263_vm3, %v3855_v42 }
 0x2c2   : > { %2499 = vmatprep.subr.bf16.mxu0 %v2498_v0  ;;  %1530 = vmatprep.mubr.f32.mxu1 %v4812_v38 }
 0x2c3   : > { %2501 = vmatpush1.bf16.msra.mxu0 %v2500_v60 }
 0x2c5   : > { %2398 = vmatmul.mubr.msk.f32.gmra.mrb[22].mxu1 %vm1263_vm3, %v3871_v63 }
 0x2c6   : > { %2392 = vmatmul.mubr.msk.f32.vlgmr.msra.gmra.mrb[14].mxu0 %vm1263_vm3, %v3841_v35  ;;  %1536 = vmatprep.mubr.f32.mxu1 %v4812_v38 }
 0x2c7   : > { %1435 = vmatprep.mubr.f32.mxu0 %v4812_v38 }
 0x2c9   : > { %2399 = vmatmul.mubr.msk.f32.gmra.mrb[24].mxu1 %vm1263_vm3, %v3910_v47 }
 0x2ca   : > { %2393 = vmatmul.mubr.msk.f32.gmra.mrb[16].mxu0 %vm1263_vm3, %v3855_v42  ;;  %1992 = vmatprep.mubr.f32.mxu1 %v4812_v38 }
 0x2cb   : > { %1441 = vmatprep.mubr.f32.mxu0 %v4812_v38 }
 0x2cc   : > { %v4004_v37 = vpop.permute.xlu1 %1245 }
 0x2cd   : > { %v4009_v5 = vpop.permute.xlu0 %1250 }
 0x2ce   : > { %2394 = vmatmul.mubr.msk.f32.gmra.mrb[18].mxu0 %vm1263_vm3, %v3871_v63 }
 0x2cf   : > { %1447 = vmatprep.mubr.f32.mxu0 %v4812_v38 }
 0x2d0   : > { %v4019_v22 = vpop.permute.xlu1 %1255 }
 0x2d1   : > { %v4036_v41 = vpop.permute.xlu0 %1260 }
 0x2d2   : > { %2395 = vmatmul.mubr.msk.f32.gmra.mrb[20].mxu0 %vm1263_vm3, %v3910_v47 }
 0x2d3   : > { %1897 = vmatprep.mubr.f32.mxu0 %v4812_v38 }
 0x378   : > { %v1342_v35 = vpop.f32.mrb[10].mxu1 }
 0x379   : > { %v1343_v12 = vadd.f32 %v1342_v35, %v4004_v37  ;;  %v1344_v42 = vpop.f32.mrb[11].mxu1 }
 0x37a   : > { %v1345_v32 = vadd.f32 %v1344_v42, %v4004_v37 }
 0x37b   : > { %v1543_v18 = vmul.f32 %v1343_v12, %v4827_v4  ;;  %v4829_v12 = vld [vmem:[#allocation33_spill] sm:$0xff] }
 0x37c   : > { %v1348_v63 = vpop.f32.mrb[12].mxu1  ;;  %v1544_v49 = vmul.f32 %v1345_v32, %v4828_v25 }
 0x37d   : > { %v4011_v43 = vmax.f32 %v1543_v18, 0.0  ;;  %v1349_v31 = vadd.f32 %v1348_v63, %v4009_v5  ;;  %v1350_v47 = vpop.f32.mrb[13].mxu1 }
 0x37e   : > { %v1351_v29 = vadd.f32 %v1350_v47, %v4009_v5  ;;  %v4025_v34 = vmax.f32 %v1544_v49, 0.0 }
 0x37f   : > { %v1549_v14 = vmul.f32 %v1349_v31, %v4827_v4  ;;  %1591 = vrot.lane.b32.xlu1 %v4011_v43, %s2847_s23 }
 0x380   : > { %v1550_v9 = vmul.f32 %v1351_v29, %v4828_v25  ;;  %v1354_v28 = vpop.f32.mrb[14].mxu1 }
 0x381   : > { %v4022_v16 = vmax.f32 %v1549_v14, 0.0  ;;  %v1355_v6 = vadd.f32 %v1354_v28, %v4019_v22  ;;  %v1356_v21 = vpop.f32.mrb[15].mxu1 }
 0x382   : > { %v4027_v45 = vmax.f32 %v1550_v9, 0.0  ;;  %v1357_v13 = vadd.f32 %v1356_v21, %v4019_v22 }
 0x383   : > { %1593 = vrot.lane.b32.xlu0 %v4022_v16, %s2847_s23  ;;  %1687 = vrot.lane.b32.xlu1 %v4011_v43, %s2848_s27  ;;  %v1555_v17 = vmul.f32 %v1355_v6, %v4827_v4 }
 0x384   : > { %v1360_v59 = vpop.f32.mrb[16].mxu1  ;;  %v1556_v40 = vmul.f32 %v1357_v13, %v4828_v25 }
 0x385   : > { %v1361_v24 = vadd.f32 %v1360_v59, %v4036_v41  ;;  %v1362_v55 = vpop.f32.mrb[17].mxu1  ;;  %v4050_v20 = vmax.f32 %v1555_v17, 0.0 }
 0x386   : > { %v1363_v33 = vadd.f32 %v1362_v55, %v4036_v41  ;;  %v4054_v48 = vmax.f32 %v1556_v40, 0.0 }
 0x387   : > { %v1561_v10 = vmul.f32 %v1361_v24, %v4827_v4  ;;  %1689 = vrot.lane.b32.xlu0 %v4022_v16, %s2848_s27  ;;  %1599 = vrot.lane.b32.xlu1 %v4025_v34, %s2847_s23 }
 0x388   : > { %v1562_v46 = vmul.f32 %v1363_v33, %v4828_v25  ;;  %v4830_v25 = vld [vmem:[#allocation34_spill] sm:$0xff] }
 0x389   : > { %v4052_v52 = vmax.f32 %v1561_v10, 0.0 }
 0x38a   : > { %v4056_v54 = vmax.f32 %v1562_v46, 0.0 }
 0x38b   : > { %1601 = vrot.lane.b32.xlu0 %v4027_v45, %s2847_s23  ;;  %1695 = vrot.lane.b32.xlu1 %v4025_v34, %s2848_s27 }
 0x38f   : > { %1697 = vrot.lane.b32.xlu0 %v4027_v45, %s2848_s27 }
 0x390   : > { %v4068_v56 = vpop.f32.mrb[18].mxu1 }
 0x391   : > { %v1522_v27 = vpop.f32.mrb[19].mxu1 }
 0x394   : > { %v4070_v36 = vpop.f32.mrb[20].mxu1 }
 0x395   : > { %v1528_v2 = vpop.f32.mrb[21].mxu1 }
 0x398   : > { %v4072_v23 = vpop.f32.mrb[22].mxu1 }
 0x399   : > { %v1431_v8 = vpop.f32.mrb[14].mxu0  ;;  %v1534_v57 = vpop.f32.mrb[23].mxu1 }
 0x39a   : > { %v1432_v60 = vadd.f32 %v1431_v8, %v4004_v37  ;;  %v1433_v0 = vpop.f32.mrb[15].mxu0 }
 0x39b   : > { %v1434_v35 = vadd.f32 %v1433_v0, %v4004_v37 }
 0x39c   : > { %v1545_v42 = vmul.f32 %v1432_v60, %v4829_v12  ;;  %v4077_v32 = vpop.f32.mrb[24].mxu1 }
 0x39d   : > { %v1437_v4 = vpop.f32.mrb[16].mxu0  ;;  %v1540_v18 = vpop.f32.mrb[25].mxu1  ;;  %v1546_v49 = vmul.f32 %v1434_v35, %v4830_v25 }
 0x39e   : > { %v4079_v63 = vmax.f32 %v1545_v42, 0.0  ;;  %v1438_v31 = vadd.f32 %v1437_v4, %v4009_v5  ;;  %v1439_v47 = vpop.f32.mrb[17].mxu0 }
 0x39f   : > { %v1440_v29 = vadd.f32 %v1439_v47, %v4009_v5  ;;  %v4091_v59 = vmax.f32 %v1546_v49, 0.0 }
 0x3a0   : > { %v1551_v14 = vmul.f32 %v1438_v31, %v4829_v12  ;;  %1703 = vrot.lane.b32.xlu1 %v4079_v63, %s2848_s27 }
 0x3a1   : > { %v1552_v9 = vmul.f32 %v1440_v29, %v4830_v25  ;;  %v1443_v28 = vpop.f32.mrb[18].mxu0  ;;  %v1523_v29 = vadd.f32 %v1522_v27, %v4004_v37  ;;  %v1521_v27 = vadd.f32 %v4068_v56, %v4004_v37 }
 0x3a2   : > { %v4088_v6 = vmax.f32 %v1551_v14, 0.0  ;;  %v1444_v21 = vadd.f32 %v1443_v28, %v4019_v22  ;;  %v1445_v13 = vpop.f32.mrb[19].mxu0  ;;  %v4831_v14 = vld [vmem:[#allocation32_spill] sm:$0xff]  ;;  %v1529_v28 = vadd.f32 %v1528_v2, %v4009_v5  ;;  %v4833_v2 = vld [vmem:[#allocation31_spill] sm:$0xff] }
 0x3a3   : > { %v4093_v17 = vmax.f32 %v1552_v9, 0.0  ;;  %v1446_v24 = vadd.f32 %v1445_v13, %v4019_v22  ;;  %v1548_v9 = vmul.f32 %v1523_v29, %v4831_v14 }
 0x3a4   : > { %1705 = vrot.lane.b32.xlu0 %v4088_v6, %s2848_s27  ;;  %1607 = vrot.lane.b32.xlu1 %v4079_v63, %s2847_s23  ;;  %v1557_v10 = vmul.f32 %v1444_v21, %v4829_v12  ;;  %v1535_v21 = vadd.f32 %v1534_v57, %v4019_v22  ;;  %v1547_v57 = vmul.f32 %v1521_v27, %v4833_v2  ;;  %v1791_v27 = vld [vmem:[%s4707_s10 + $0x18] sm:$0xff] }
 0x3a5   : > { %v1449_v40 = vpop.f32.mrb[20].mxu0  ;;  %v1558_v60 = vmul.f32 %v1446_v24, %v4830_v25  ;;  %v4152_v13 = vmax.f32 %v1548_v9, 0.0  ;;  %v1554_v24 = vmul.f32 %v1529_v28, %v4831_v14  ;;  %v1790_v9 = vld [vmem:[%s4707_s10 + $0x10] sm:$0xff] }
 0x3a6   : > { %v1450_v46 = vadd.f32 %v1449_v40, %v4036_v41  ;;  %v1451_v8 = vpop.f32.mrb[21].mxu0  ;;  %v4114_v4 = vmax.f32 %v1557_v10, 0.0  ;;  %v1560_v40 = vmul.f32 %v1535_v21, %v4831_v14  ;;  %v1541_v10 = vadd.f32 %v1540_v18, %v4036_v41 }
 0x3a7   : > { %v1452_v0 = vadd.f32 %v1451_v8, %v4036_v41  ;;  %v4118_v47 = vmax.f32 %v1558_v60, 0.0  ;;  %4832 = vst [vmem:[#allocation38_spill] sm:$0xff] %v4152_v13  ;;  %v4164_v37 = vmax.f32 %v1554_v24, 0.0  ;;  %v4173_v18 = vmax.f32 %v1547_v57, 0.0  ;;  %v1792_v24 = vld [vmem:[%s4707_s10 + $0x20] sm:$0xff] }
 0x3a8   : > { %v1563_v35 = vmul.f32 %v1450_v46, %v4829_v12  ;;  %1609 = vrot.lane.b32.xlu0 %v4088_v6, %s2847_s23  ;;  %1615 = vrot.lane.b32.xlu1 %v4091_v59, %s2847_s23  ;;  %v1527_v46 = vadd.f32 %v4070_v36, %v4009_v5  ;;  %v4166_v56 = vmax.f32 %v1560_v40, 0.0  ;;  %v1566_v8 = vmul.f32 %v1541_v10, %v4831_v14  ;;  %v1789_v14 = vld [vmem:[%s4707_s10 + $0x8] sm:$0xff] }
 0x3a9   : > { %v1564_v42 = vmul.f32 %v1452_v0, %v4830_v25  ;;  %4834 = vst [vmem:[#allocation37_spill] sm:$0xff] %v4164_v37  ;;  %4836 = vst [vmem:[#allocation27_spill] sm:$0xff] %v4173_v18  ;;  %v1533_v36 = vadd.f32 %v4072_v23, %v4019_v22 }
 0x3aa   : > { %v4116_v31 = vmax.f32 %v1563_v35, 0.0  ;;  %4835 = vst [vmem:[#allocation28_spill] sm:$0xff] %v4166_v56  ;;  %v1553_v60 = vmul.f32 %v1527_v46, %v4833_v2  ;;  %v4176_v0 = vmax.f32 %v1566_v8, 0.0  ;;  %v4841_v8 = vld [vmem:[#allocation19_spill] sm:$0xff] }
 0x3ab   : > { %v4120_v49 = vmax.f32 %v1564_v42, 0.0  ;;  %v1559_v35 = vmul.f32 %v1533_v36, %v4833_v2  ;;  %v1539_v42 = vadd.f32 %v4077_v32, %v4036_v41  ;;  %v1788_v41 = vld [vmem:[%s4707_s10] sm:$0xff] }
 0x3ac   : > { %1617 = vrot.lane.b32.xlu0 %v4093_v17, %s2847_s23  ;;  %1595 = vrot.lane.b32.xlu1 %v4050_v20, %s2847_s23  ;;  %4837 = vst [vmem:[#allocation36_spill] sm:$0xff] %v4176_v0  ;;  %v4182_v5 = vmax.f32 %v1553_v60, 0.0 }
 0x3ad   : > { %v4197_v29 = vmax.f32 %v1559_v35, 0.0  ;;  %v1565_v22 = vmul.f32 %v1539_v42, %v4833_v2 }
 0x3ae   : > { %4838 = vst [vmem:[#allocation35_spill] sm:$0xff] %v4182_v5 }
 0x3af   : > { %4839 = vst [vmem:[#allocation29_spill] sm:$0xff] %v4197_v29  ;;  %v4204_v23 = vmax.f32 %v1565_v22, 0.0 }
 0x3b0   : > { %1597 = vrot.lane.b32.xlu0 %v4052_v52, %s2847_s23  ;;  %1691 = vrot.lane.b32.xlu1 %v4050_v20, %s2848_s27 }
 0x3b1   : > { %4840 = vst [vmem:[#allocation30_spill] sm:$0xff] %v4204_v23 }
 0x3b4   : > { %1693 = vrot.lane.b32.xlu0 %v4052_v52, %s2848_s27  ;;  %1603 = vrot.lane.b32.xlu1 %v4054_v48, %s2847_s23 }
 0x3b8   : > { %1605 = vrot.lane.b32.xlu0 %v4056_v54, %s2847_s23  ;;  %1699 = vrot.lane.b32.xlu1 %v4054_v48, %s2848_s27 }
 0x3bc   : > { %1701 = vrot.lane.b32.xlu0 %v4056_v54, %s2848_s27  ;;  %1707 = vrot.lane.b32.xlu1 %v4114_v4, %s2848_s27 }
 0x3c0   : > { %1709 = vrot.lane.b32.xlu0 %v4116_v31, %s2848_s27  ;;  %1631 = vrot.lane.b32.xlu1 %v4152_v13, %s2847_s23 }
 0x3c4   : > { %1633 = vrot.lane.b32.xlu0 %v4164_v37, %s2847_s23  ;;  %1635 = vrot.lane.b32.xlu1 %v4166_v56, %s2847_s23 }
 0x3c8   : > { %1637 = vrot.lane.b32.xlu0 %v4176_v0, %s2847_s23  ;;  %1623 = vrot.lane.b32.xlu1 %v4173_v18, %s2847_s23 }
 0x3cc   : > { %1625 = vrot.lane.b32.xlu0 %v4182_v5, %s2847_s23  ;;  %1611 = vrot.lane.b32.xlu1 %v4114_v4, %s2847_s23 }
 0x3d0   : > { %1613 = vrot.lane.b32.xlu0 %v4116_v31, %s2847_s23  ;;  %1619 = vrot.lane.b32.xlu1 %v4118_v47, %s2847_s23 }
 0x3d4   : > { %1621 = vrot.lane.b32.xlu0 %v4120_v49, %s2847_s23  ;;  %1627 = vrot.lane.b32.xlu1 %v4197_v29, %s2847_s23 }
 0x3d8   : > { %1629 = vrot.lane.b32.xlu0 %v4204_v23, %s2847_s23  ;;  %1711 = vrot.lane.b32.xlu1 %v4091_v59, %s2848_s27 }
 0x3dc   : > { %1713 = vrot.lane.b32.xlu0 %v4093_v17, %s2848_s27  ;;  %1719 = vrot.lane.b32.xlu1 %v4173_v18, %s2848_s27 }
 0x3e0   : > { %1721 = vrot.lane.b32.xlu0 %v4182_v5, %s2848_s27  ;;  %1727 = vrot.lane.b32.xlu1 %v4152_v13, %s2848_s27 }
 0x3e4   : > { %1729 = vrot.lane.b32.xlu0 %v4164_v37, %s2848_s27  ;;  %1715 = vrot.lane.b32.xlu1 %v4118_v47, %s2848_s27 }
 0x3e8   : > { %1717 = vrot.lane.b32.xlu0 %v4120_v49, %s2848_s27  ;;  %1723 = vrot.lane.b32.xlu1 %v4197_v29, %s2848_s27 }
 0x3ec   : > { %1725 = vrot.lane.b32.xlu0 %v4204_v23, %s2848_s27  ;;  %1731 = vrot.lane.b32.xlu1 %v4166_v56, %s2848_s27 }
 0x3f0   : > { %1733 = vrot.lane.b32.xlu0 %v4176_v0, %s2848_s27  ;;  %1795 = vperm.xlu1 %2679, %v1788_v41  }
 0x3f1   : > { %v1592_v32 = vpop.permute.xlu1 %1591 }
 0x3f4   : > { %1800 = vperm.xlu0 %2678, %v1789_v14   ;;  %1805 = vperm.xlu1 %2679, %v1790_v9  }
 0x3f5   : > { %v1594_v28 = vpop.permute.xlu0 %1593  ;;  %v4241_v21 = vpop.permute.xlu1 %1687 }
 0x3f8   : > { %1810 = vperm.xlu0 %2678, %v1791_v27   ;;  %1815 = vperm.xlu1 %2679, %v1792_v24  }
 0x3f9   : > { %v4249_v40 = vpop.permute.xlu0 %1689  ;;  %v1600_v10 = vpop.permute.xlu1 %1599 }
 0x3fa   : > { %v1655_v2 = vsel %vm520_vm0, %v1592_v32, %v1600_v10 }
 0x3fb   : > { %v1664_v60 = vmul.f32 %v1655_v2, %v4841_v8 }
 0x3fd   : > { %v1602_v57 = vpop.permute.xlu0 %1601  ;;  %v4257_v42 = vpop.permute.xlu1 %1695 }
 0x3fe   : > { %v1656_v46 = vsel %vm520_vm0, %v1594_v28, %v1602_v57 }
 0x3ff   : > { %v1670_v36 = vmul.f32 %v1656_v46, %v4841_v8 }
 0x401   : > { %v2526_v35 = vpack.c.bf16 %v1670_v36, %v1664_v60  ;;  %v1698_v22 = vpop.permute.xlu0 %1697 }
 0x403   : > { %2527 = vmatprep.subr.bf16.mxu0 %v2526_v35 }
 0x412   : > { %v4259_v41 = vpop.permute.xlu1 %1703 }
 0x416   : > { %v4261_v14 = vpop.permute.xlu0 %1705  ;;  %v1608_v9 = vpop.permute.xlu1 %1607 }
 0x417   : > { %v1651_v46 = vsel %vm520_vm0, %v1600_v10, %v1608_v9 }
 0x418   : > { %v1665_v33 = vmul.f32 %v1651_v46, %v3365_v19 }
 0x41a   : > { %v1610_v27 = vpop.permute.xlu0 %1609  ;;  %v4263_v24 = vpop.permute.xlu1 %1615 }
 0x41b   : > { %v1652_v12 = vsel %vm520_vm0, %v1602_v57, %v1610_v27  ;;  %v1647_v2 = vsel %vm520_vm0, %v1608_v9, %v4263_v24 }
 0x41c   : > { %v1671_v35 = vmul.f32 %v1652_v12, %v3365_v19  ;;  %v1666_v55 = vmul.f32 %v1647_v2, %v3374_v11 }
 0x41e   : > { %v4272_v60 = vpop.permute.xlu0 %1617  ;;  %v1596_v36 = vpop.permute.xlu1 %1595  ;;  %v2552_v10 = vpack.c.bf16 %v1671_v35, %v1665_v33 }
 0x41f   : > { %v1648_v25 = vsel %vm520_vm0, %v1610_v27, %v4272_v60 }
 0x420   : > { %v1672_v57 = vmul.f32 %v1648_v25, %v3374_v11 }
 0x422   : > { %v1598_v61 = vpop.permute.xlu0 %1597  ;;  %v4281_v50 = vpop.permute.xlu1 %1691  ;;  %v2550_v15 = vpack.c.bf16 %v1672_v57, %v1666_v55 }
 0x424   : > { %2551 = vmatprep.subr.bf16.mxu1 %v2550_v15 }
 0x425   : > { %2553 = vmatpush1.bf16.msra.mxu1 %v2552_v10 }
 0x426   : > { %v4283_v9 = vpop.permute.xlu0 %1693  ;;  %v1604_v12 = vpop.permute.xlu1 %1603 }
 0x427   : > { %v1657_v15 = vsel %vm520_vm0, %v1596_v36, %v1604_v12 }
 0x428   : > { %v1676_v56 = vmul.f32 %v1657_v15, %v4841_v8 }
 0x42a   : > { %v1606_v7 = vpop.permute.xlu0 %1605  ;;  %v1700_v23 = vpop.permute.xlu1 %1699 }
 0x42b   : > { %v1658_v46 = vsel %vm520_vm0, %v1598_v61, %v1606_v7 }
 0x42c   : > { %v1682_v57 = vmul.f32 %v1658_v46, %v4841_v8 }
 0x42e   : > { %v1702_v29 = vpop.permute.xlu0 %1701  ;;  %v4285_v27 = vpop.permute.xlu1 %1707  ;;  %v2530_v46 = vpack.c.bf16 %v1682_v57, %v1676_v56  ;;  %v4844_v57 = vpack.c.bf16 %v4056_v54, %v4054_v48 }
 0x432   : > { %v4287_v2 = vpop.permute.xlu0 %1709  ;;  %v1632_v25 = vpop.permute.xlu1 %1631 }
 0x433   : > { %v1659_v55 = vsel %vm520_vm0, %v1632_v25, %v1592_v32 }
 0x434   : > { %v1663_v62 = vmul.f32 %v1659_v55, %v3238_v39 }
 0x436   : > { %v1634_v33 = vpop.permute.xlu0 %1633  ;;  %v4295_v35 = vpop.permute.xlu1 %1635 }
 0x437   : > { %v1660_v10 = vsel %vm520_vm0, %v1634_v33, %v1594_v28  ;;  %v1661_v32 = vsel %vm520_vm0, %v4295_v35, %v1596_v36  ;;  %v1748_v36 = vsel %vm600_vm1, %v1698_v22, %v4261_v14 }
 0x438   : > { %v1669_v0 = vmul.f32 %v1660_v10, %v3238_v39  ;;  %v1675_v13 = vmul.f32 %v1661_v32, %v3238_v39 }
 0x43a   : > { %v2528_v44 = vpack.c.bf16 %v1669_v0, %v1663_v62  ;;  %v1638_v5 = vpop.permute.xlu0 %1637  ;;  %v1624_v18 = vpop.permute.xlu1 %1623  ;;  %v1747_v62 = vsel %vm600_vm1, %v4257_v42, %v4259_v41  ;;  %v1750_v0 = vsel %vm600_vm1, %v1702_v29, %v4287_v2 }
 0x43b   : > { %v1662_v37 = vsel %vm520_vm0, %v1638_v5, %v1598_v61  ;;  %v4842_v61 = vpack.c.bf16 %v4027_v45, %v4025_v34  ;;  %v1760_v56 = vmul.f32 %v1747_v62, %v3254_v51  ;;  %v4843_v34 = vpack.c.bf16 %v4022_v16, %v4011_v43 }
 0x43c   : > { %v1681_v28 = vmul.f32 %v1662_v37, %v3238_v39  ;;  %2529 = vmatpush1.bf16.msra.mxu0 %v2528_v44  ;;  %v1766_v39 = vmul.f32 %v1748_v36, %v3254_v51  ;;  %v1752_v37 = vsel %vm600_vm1, %v4249_v40, %v1698_v22  ;;  %v1751_v45 = vsel %vm600_vm1, %v4241_v21, %v4257_v42 }
 0x43d   : > { %2531 = vmatprep.subr.bf16.mxu0 %v2530_v46  ;;  %v1765_v32 = vmul.f32 %v1752_v37, %v3272_v58  ;;  %v1754_v42 = vsel %vm600_vm1, %v4283_v9, %v1702_v29  ;;  %v1759_v36 = vmul.f32 %v1751_v45, %v3272_v58  ;;  %v1753_v29 = vsel %vm600_vm1, %v4281_v50, %v1700_v23 }
 0x43e   : > { %v2532_v55 = vpack.c.bf16 %v1681_v28, %v1675_v13  ;;  %v1626_v10 = vpop.permute.xlu0 %1625  ;;  %v1612_v8 = vpop.permute.xlu1 %1611  ;;  %v2542_v28 = vpack.c.bf16 %v1766_v39, %v1760_v56  ;;  %v1639_v56 = vsel %vm520_vm0, %v1624_v18, %v1632_v25  ;;  %v1643_v25 = vsel %vm520_vm0, %v4263_v24, %v1624_v18 }
 0x43f   : > { %v1653_v43 = vsel %vm520_vm0, %v1604_v12, %v1612_v8  ;;  %v1640_v62 = vsel %vm520_vm0, %v1626_v10, %v1634_v33  ;;  %v2544_v37 = vpack.c.bf16 %v1765_v32, %v1759_v36  ;;  %v1777_v33 = vmul.f32 %v1754_v42, %v3272_v58 }
 0x440   : > { %2533 = vmatpush1.bf16.msra.mxu0 %v2532_v55  ;;  %v1778_v55 = vmul.f32 %v1750_v0, %v3254_v51  ;;  %v1668_v45 = vmul.f32 %v1639_v56, %v3287_v3 }
 0x441   : > { %2535 = vmatprep.subr.bf16.mxu0 %v4842_v61  ;;  %v4845_v61 = vpack.c.bf16 %v4052_v52, %v4050_v20  ;;  %v1644_v20 = vsel %vm520_vm0, %v4272_v60, %v1626_v10  ;;  %v1674_v52 = vmul.f32 %v1640_v62, %v3287_v3  ;;  %v4849_v62 = vpack.c.bf16 %v4116_v31, %v4114_v4  ;;  %v4444_v4 = vld [vmem:[%s4706_s9 + $0x10] sm:$0xff] }
 0x442   : > { %v1614_v44 = vpop.permute.xlu0 %1613  ;;  %v1620_v13 = vpop.permute.xlu1 %1619  ;;  %v1673_v10 = vmul.f32 %v1644_v20, %v3300_v30 }
 0x443   : > { %v1654_v15 = vsel %vm520_vm0, %v1606_v7, %v1614_v44  ;;  %v1649_v22 = vsel %vm520_vm0, %v1612_v8, %v1620_v13  ;;  %v1749_v7 = vsel %vm600_vm1, %v1700_v23, %v4285_v27  ;;  %v2574_v32 = vpack.c.bf16 %v1674_v52, %v1668_v45  ;;  %v4854_v52 = vld [vmem:[#allocation23_spill] sm:$0xff]  ;;  %v1786_v45 = vld [vmem:[%s4706_s9 + $0x18] sm:$0xff] }
 0x444   : > { %2537 = vmatpush1.bf16.msra.mxu0 %v4843_v34  ;;  %v1683_v48 = vmul.f32 %v1654_v15, %v3365_v19  ;;  %v1678_v12 = vmul.f32 %v1649_v22, %v3374_v11  ;;  %v1772_v39 = vmul.f32 %v1749_v7, %v3254_v51  ;;  %v1667_v7 = vmul.f32 %v1643_v25, %v3300_v30 }
 0x445   : > { %2539 = vmatprep.subr.bf16.mxu0 %v4844_v57 }
 0x446   : > { %v1622_v16 = vpop.permute.xlu0 %1621  ;;  %v1628_v46 = vpop.permute.xlu1 %1627  ;;  %v2546_v51 = vpack.c.bf16 %v1778_v55, %v1772_v39  ;;  %v4850_v39 = vld [vmem:[#allocation38_spill] sm:$0xff] }
 0x447   : > { %v1650_v54 = vsel %vm520_vm0, %v1614_v44, %v1622_v16  ;;  %v1677_v44 = vmul.f32 %v1653_v43, %v3365_v19  ;;  %v1771_v19 = vmul.f32 %v1753_v29, %v3272_v58  ;;  %v1641_v58 = vsel %vm520_vm0, %v1628_v46, %v4295_v35  ;;  %v4399_v35 = vld [vmem:[%s4706_s9] sm:$0xff] }
 0x448   : > { %v1684_v8 = vmul.f32 %v1650_v54, %v3374_v11  ;;  %2541 = vmatpush1.bf16.msra.mxu0 %v4845_v61 }
 0x449   : > { %2543 = vmatprep.subr.bf16.mxu0 %v2542_v28  ;;  %v2556_v23 = vpack.c.bf16 %v1683_v48, %v1677_v44  ;;  %v2548_v60 = vpack.c.bf16 %v1777_v33, %v1771_v19  ;;  %v4847_v28 = vpack.c.bf16 %v4088_v6, %v4079_v63  ;;  %v4851_v44 = vld [vmem:[#allocation37_spill] sm:$0xff]  ;;  %v4856_v19 = vld [vmem:[#allocation36_spill] sm:$0xff] }
 0x44a   : > { %v1630_v11 = vpop.permute.xlu0 %1629  ;;  %v1712_v0 = vpop.permute.xlu1 %1711  ;;  %v2554_v15 = vpack.c.bf16 %v1684_v8, %v1678_v12 }
 0x44b   : > { %v1642_v34 = vsel %vm520_vm0, %v1630_v11, %v1638_v5  ;;  %v4846_v5 = vpack.c.bf16 %v4093_v17, %v4091_v59  ;;  %v1646_v18 = vsel %vm520_vm0, %v1622_v16, %v1630_v11  ;;  %v1645_v59 = vsel %vm520_vm0, %v1620_v13, %v1628_v46 }
 0x44c   : > { %2545 = vmatpush1.bf16.msra.mxu0 %v2544_v37  ;;  %2555 = vmatprep.subr.bf16.mxu1 %v2554_v15  ;;  %v1686_v24 = vmul.f32 %v1642_v34, %v3287_v3  ;;  %v1680_v17 = vmul.f32 %v1641_v58, %v3287_v3  ;;  %v1685_v42 = vmul.f32 %v1646_v18, %v3300_v30  ;;  %v4853_v15 = vld [vmem:[#allocation35_spill] sm:$0xff]  ;;  %v4857_v58 = vld [vmem:[#allocation25_spill] sm:$0xff] }
 0x44d   : > { %2547 = vmatprep.subr.bf16.mxu0 %v2546_v51  ;;  %2557 = vmatpush1.bf16.msra.mxu1 %v2556_v23  ;;  %v1743_v55 = vsel %vm600_vm1, %v4259_v41, %v1712_v0  ;;  %v4848_v13 = vpack.c.bf16 %v4120_v49, %v4118_v47  ;;  %v1679_v54 = vmul.f32 %v1645_v59, %v3300_v30  ;;  %v4428_v47 = vld [vmem:[%s4706_s9 + $0x8] sm:$0xff]  ;;  %v4858_v18 = vld [vmem:[#allocation29_spill] sm:$0xff] }
 0x44e   : > { %v1714_v22 = vpop.permute.xlu0 %1713  ;;  %2559 = vmatprep.subr.bf16.mxu1 %v4846_v5  ;;  %v1720_v57 = vpop.permute.xlu1 %1719  ;;  %v2578_v6 = vpack.c.bf16 %v1686_v24, %v1680_v17  ;;  %v1761_v49 = vmul.f32 %v1743_v55, %v4822_v53  ;;  %v2582_v37 = vpack.c.bf16 %v4851_v44, %v4850_v39  ;;  %v4855_v51 = vld [vmem:[#allocation28_spill] sm:$0xff]  ;;  %v4859_v24 = vld [vmem:[#allocation30_spill] sm:$0xff] }
 0x44f   : > { %v1744_v43 = vsel %vm600_vm1, %v4261_v14, %v1714_v22  ;;  %v1739_v16 = vsel %vm600_vm1, %v1712_v0, %v1720_v57  ;;  %v2576_v14 = vpack.c.bf16 %v1673_v10, %v1667_v7  ;;  %v2580_v30 = vpack.c.bf16 %v1685_v42, %v1679_v54  ;;  %v4852_v0 = vld [vmem:[#allocation27_spill] sm:$0xff] }
 0x450   : > { %2549 = vmatpush1.bf16.msra.mxu0 %v2548_v60  ;;  %v1767_v46 = vmul.f32 %v1744_v43, %v4822_v53  ;;  %v1762_v36 = vmul.f32 %v1739_v16, %v4823_v1  ;;  %v2586_v34 = vpack.c.bf16 %v4856_v19, %v4855_v51 }
 0x451   : > { %2561 = vmatpush1.bf16.msra.mxu1 %v4847_v28  ;;  %2575 = vmatprep.subr.bf16.mxu0 %v2574_v32  ;;  %v2588_v32 = vpack.c.bf16 %v4859_v24, %v4858_v18 }
 0x452   : > { %v1722_v48 = vpop.permute.xlu0 %1721  ;;  %2563 = vmatprep.subr.bf16.mxu1 %v4848_v13  ;;  %v1728_v3 = vpop.permute.xlu1 %1727  ;;  %v2568_v29 = vpack.c.bf16 %v1767_v46, %v1761_v49 }
 0x453   : > { %v1740_v63 = vsel %vm600_vm1, %v1714_v22, %v1722_v48  ;;  %2400 = vmatmul.mubr.msk.f32.vlgmr.msra.gmra.mrb[22].mxu0 %vm1263_vm3, %v4399_v35  ;;  %v1755_v31 = vsel %vm600_vm1, %v1728_v3, %v4241_v21  ;;  %v1735_v21 = vsel %vm600_vm1, %v1720_v57, %v1728_v3 }
 0x454   : > { %v1768_v41 = vmul.f32 %v1740_v63, %v4823_v1  ;;  %2577 = vmatpush1.bf16.msra.mxu0 %v2576_v14  ;;  %1903 = vmatprep.mubr.f32.mxu0 %v4812_v38  ;;  %v1764_v60 = vmul.f32 %v1755_v31, %v4854_v52  ;;  %v1763_v7 = vmul.f32 %v1735_v21, %v4857_v58  ;;  %v1787_v14 = vld [vmem:[%s4706_s9 + $0x20] sm:$0xff] }
 0x455   : > { %2565 = vmatpush1.bf16.msra.mxu1 %v4849_v62  ;;  %2579 = vmatprep.subr.bf16.mxu0 %v2578_v6  ;;  %v4861_v62 = vld [vmem:[#allocation18_spill] sm:$0xff] }
 0x456   : > { %v1730_v12 = vpop.permute.xlu0 %1729  ;;  %v1716_v8 = vpop.permute.xlu1 %1715  ;;  %v2566_v61 = vpack.c.bf16 %v1768_v41, %v1762_v36 }
 0x457   : > { %2401 = vmatmul.mubr.msk.f32.gmra.mrb[24].mxu0 %vm1263_vm3, %v4428_v47  ;;  %v1756_v33 = vsel %vm600_vm1, %v1730_v12, %v4249_v40  ;;  %v2584_v40 = vpack.c.bf16 %v4853_v15, %v4852_v0  ;;  %v1736_v20 = vsel %vm600_vm1, %v1722_v48, %v1730_v12  ;;  %v1745_v5 = vsel %vm600_vm1, %v4285_v27, %v1716_v8 }
 0x458   : > { %2567 = vmatprep.subr.bf16.mxu1 %v2566_v61  ;;  %2581 = vmatpush1.bf16.msra.mxu0 %v2580_v30  ;;  %v1770_v23 = vmul.f32 %v1756_v33, %v4854_v52  ;;  %v1769_v22 = vmul.f32 %v1736_v20, %v4857_v58  ;;  %v1773_v42 = vmul.f32 %v1745_v5, %v4822_v53 }
 0x459   : > { %2569 = vmatpush1.bf16.msra.mxu1 %v2568_v29  ;;  %2583 = vmatprep.subr.bf16.mxu0 %v2582_v37  ;;  %v2126_v30 = vrot.slane %v4531_v26, %v4861_v62 }
 0x45a   : > { %v1718_v56 = vpop.permute.xlu0 %1717  ;;  %v1724_v11 = vpop.permute.xlu1 %1723  ;;  %1909 = vmatprep.mubr.f32.mxu0 %v4812_v38  ;;  %v2590_v17 = vpack.c.bf16 %v1770_v23, %v1764_v60  ;;  %v2592_v48 = vpack.c.bf16 %v1769_v22, %v1763_v7 }
 0x45b   : > { %2402 = vmatmul.mubr.msk.f32.gmra.mrb[26].mxu0 %vm1263_vm3, %v4444_v4  ;;  %v1746_v25 = vsel %vm600_vm1, %v4287_v2, %v1718_v56  ;;  %v1741_v10 = vsel %vm600_vm1, %v1716_v8, %v1724_v11 }
 0x45c   : > { %2585 = vmatpush1.bf16.msra.mxu0 %v2584_v40  ;;  %1915 = vmatprep.mubr.f32.mxu0 %v4812_v38  ;;  %v1779_v43 = vmul.f32 %v1746_v25, %v4822_v53  ;;  %v1774_v16 = vmul.f32 %v1741_v10, %v4823_v1 }
 0x45d   : > { %2587 = vmatprep.subr.bf16.mxu0 %v2586_v34 }
 0x45e   : > { %v1726_v2 = vpop.permute.xlu0 %1725  ;;  %v1732_v57 = vpop.permute.xlu1 %1731  ;;  %v2572_v3 = vpack.c.bf16 %v1779_v43, %v1773_v42 }
 0x45f   : > { %v1742_v59 = vsel %vm600_vm1, %v1718_v56, %v1726_v2  ;;  %2403 = vmatmul.mubr.msk.f32.gmra.mrb[28].mxu0 %vm1263_vm3, %v1786_v45  ;;  %v1737_v27 = vsel %vm600_vm1, %v1724_v11, %v1732_v57  ;;  %v1757_v55 = vsel %vm600_vm1, %v1732_v57, %v4281_v50 }
 0x460   : > { %v1780_v28 = vmul.f32 %v1742_v59, %v4823_v1  ;;  %2589 = vmatpush1.bf16.msra.mxu0 %v2588_v32  ;;  %1921 = vmatprep.mubr.f32.mxu0 %v4812_v38  ;;  %v1775_v46 = vmul.f32 %v1737_v27, %v4857_v58  ;;  %v1776_v53 = vmul.f32 %v1757_v55, %v4854_v52  ;;  %v4862_v27 = vld [vmem:[#allocation24_spill] sm:$0xff] }
 0x461   : > { %2591 = vmatprep.subr.bf16.mxu0 %v2590_v17 }
 0x462   : > { %v1734_v13 = vpop.permute.xlu0 %1733  ;;  %v2570_v1 = vpack.c.bf16 %v1780_v28, %v1774_v16 }
 0x463   : > { %v1738_v63 = vsel %vm600_vm1, %v1726_v2, %v1734_v13  ;;  %v1758_v6 = vsel %vm600_vm1, %v1734_v13, %v4283_v9  ;;  %2404 = vmatmul.mubr.msk.f32.gmra.mrb[30].mxu0 %vm1263_vm3, %v1787_v14  ;;  %v4860_v9 = vld [vmem:[#allocation20_spill] sm:$0xff] }
 0x464   : > { %v1781_v50 = vmul.f32 %v1738_v63, %v4857_v58  ;;  %v1782_v54 = vmul.f32 %v1758_v6, %v4854_v52  ;;  %2571 = vmatprep.subr.bf16.mxu1 %v2570_v1  ;;  %2593 = vmatpush1.bf16.msra.mxu0 %v2592_v48  ;;  %v4863_v48 = vld [vmem:[#allocation26_spill] sm:$0xff] }
 0x465   : > { %2573 = vmatpush1.bf16.msra.mxu1 %v2572_v3  ;;  %2087 = vmatprep.mubr.f32.mxu0 %v4812_v38  ;;  %v4574_v13 = vrot.slane %v4531_v26, %v4863_v48 }
 0x466   : > { %v2596_v36 = vpack.c.bf16 %v1781_v50, %v1775_v46  ;;  %v2594_v41 = vpack.c.bf16 %v1782_v54, %v1776_v53  ;;  %v4864_v53 = vld [vmem:[#allocation22_spill] sm:$0xff] }
 0x467   : > { %v4583_v50 = vrot.slane %v4531_v26, %v4864_v53 }
 0x468   : > { %2405 = vmatmul.mubr.msk.f32.vlgmr.msra.gmra.mrb[26].mxu1 %vm1263_vm3, %v4399_v35  ;;  %2595 = vmatprep.subr.bf16.mxu0 %v2594_v41 }
 0x469   : > { %2597 = vmatpush1.bf16.msra.mxu0 %v2596_v36  ;;  %1998 = vmatprep.mubr.f32.mxu1 %v4812_v38 }
 0x46c   : > { %2406 = vmatmul.mubr.msk.f32.gmra.mrb[28].mxu1 %vm1263_vm3, %v4428_v47  ;;  %2410 = vmatmul.mubr.msk.f32.vlgmr.msra.gmra.mrb[32].mxu0 %vm1263_vm3, %v4399_v35  ;;  %v2122_v35 = vrot.slane %v4531_v26, %v4860_v9  ;;  %v4865_v9 = vld [vmem:[#allocation21_spill] sm:$0xff] }
 0x46d   : > { %2004 = vmatprep.mubr.f32.mxu1 %v4812_v38  ;;  %2093 = vmatprep.mubr.f32.mxu0 %v4812_v38 }
 0x470   : > { %2407 = vmatmul.mubr.msk.f32.gmra.mrb[30].mxu1 %vm1263_vm3, %v4444_v4  ;;  %2411 = vmatmul.mubr.msk.f32.gmra.mrb[34].mxu0 %vm1263_vm3, %v4428_v47  ;;  %v4535_v47 = vpop.permute.xlu1 %1795 }
 0x471   : > { %2010 = vmatprep.mubr.f32.mxu1 %v4812_v38  ;;  %2099 = vmatprep.mubr.f32.mxu0 %v4812_v38 }
 0x473   : > { %v4542_v29 = vpop.permute.xlu0 %1800 }
 0x474   : > { %2408 = vmatmul.mubr.msk.f32.gmra.mrb[32].mxu1 %vm1263_vm3, %v1786_v45  ;;  %2412 = vmatmul.mubr.msk.f32.gmra.mrb[36].mxu0 %vm1263_vm3, %v4444_v4  ;;  %v4549_v0 = vpop.permute.xlu1 %1805 }
 0x475   : > { %2016 = vmatprep.mubr.f32.mxu1 %v4812_v38  ;;  %2105 = vmatprep.mubr.f32.mxu0 %v4812_v38 }
 0x477   : > { %v4555_v21 = vpop.permute.xlu0 %1810 }
 0x478   : > { %2409 = vmatmul.mubr.msk.f32.gmra.mrb[34].mxu1 %vm1263_vm3, %v1787_v14  ;;  %2413 = vmatmul.mubr.msk.f32.gmra.mrb[38].mxu0 %vm1263_vm3, %v1786_v45  ;;  %v4561_v57 = vpop.permute.xlu1 %1815 }
 0x479   : > { %2111 = vmatprep.mubr.f32.mxu0 %v4812_v38 }
 0x47c   : > { %2414 = vmatmul.mubr.msk.f32.gmra.mrb[40].mxu0 %vm1263_vm3, %v1787_v14  ;;  %v4570_v14 = vrot.slane %v4531_v26, %v4862_v27 }
 0x526   : > { %v1899_v49 = vpop.f32.mrb[22].mxu0 }
 0x527   : > { %v1900_v12 = vadd.f32 %v1899_v49, %v4535_v47  ;;  %v1901_v8 = vpop.f32.mrb[23].mxu0 }
 0x528   : > { %v1902_v38 = vadd.f32 %v1901_v8, %v4535_v47 }
 0x529   : > { %v2149_v61 = vmul.f32 %v2122_v35, %v1900_v12 }
 0x52a   : > { %v2150_v39 = vmul.f32 %v2126_v30, %v1902_v38  ;;  %v1905_v44 = vpop.f32.mrb[24].mxu0 }
 0x52b   : > { %v2179_v37 = vmax.f32 %v2149_v61, 0.0  ;;  %v1906_v33 = vadd.f32 %v1905_v44, %v4542_v29  ;;  %v1907_v4 = vpop.f32.mrb[25].mxu0 }
 0x52c   : > { %v2180_v31 = vmax.f32 %v2150_v39, 0.0  ;;  %v1908_v56 = vadd.f32 %v1907_v4, %v4542_v29 }
 0x52d   : > { %2209 = vst [vmem:[%s4546_s19] sm:$0xff] %v2179_v37  ;;  %v2155_v11 = vmul.f32 %v2122_v35, %v1906_v33 }
 0x52e   : > { %2210 = vst [vmem:[%s4546_s19 + $0x8] sm:$0xff] %v2180_v31  ;;  %v2156_v15 = vmul.f32 %v2126_v30, %v1908_v56  ;;  %v1911_v40 = vpop.f32.mrb[26].mxu0 }
 0x52f   : > { %v2185_v20 = vmax.f32 %v2155_v11, 0.0  ;;  %v1912_v52 = vadd.f32 %v1911_v40, %v4549_v0  ;;  %v1913_v23 = vpop.f32.mrb[27].mxu0 }
 0x530   : > { %v2186_v51 = vmax.f32 %v2156_v15, 0.0  ;;  %v1914_v19 = vadd.f32 %v1913_v23, %v4549_v0 }
 0x531   : > { %2215 = vst [vmem:[%s4546_s19 + $0x30] sm:$0xff] %v2185_v20  ;;  %v2161_v34 = vmul.f32 %v2122_v35, %v1912_v52 }
 0x532   : > { %2216 = vst [vmem:[%s4546_s19 + $0x38] sm:$0xff] %v2186_v51  ;;  %v2162_v25 = vmul.f32 %v2126_v30, %v1914_v19  ;;  %v1917_v45 = vpop.f32.mrb[28].mxu0 }
 0x533   : > { %v2191_v60 = vmax.f32 %v2161_v34, 0.0  ;;  %v1918_v10 = vadd.f32 %v1917_v45, %v4555_v21  ;;  %v1919_v58 = vpop.f32.mrb[29].mxu0 }
 0x534   : > { %v2192_v22 = vmax.f32 %v2162_v25, 0.0  ;;  %v1920_v5 = vadd.f32 %v1919_v58, %v4555_v21 }
 0x535   : > { %2221 = vst [vmem:[%s4546_s19 + $0x60] sm:$0xff] %v2191_v60  ;;  %v2167_v2 = vmul.f32 %v2122_v35, %v1918_v10 }
 0x536   : > { %2222 = vst [vmem:[%s4546_s19 + $0x68] sm:$0xff] %v2192_v22  ;;  %v2168_v18 = vmul.f32 %v2126_v30, %v1920_v5  ;;  %v1923_v24 = vpop.f32.mrb[30].mxu0 }
 0x537   : > { %v2197_v32 = vmax.f32 %v2167_v2, 0.0  ;;  %v1924_v7 = vadd.f32 %v1923_v24, %v4561_v57  ;;  %v1925_v43 = vpop.f32.mrb[31].mxu0 }
 0x538   : > { %v2198_v59 = vmax.f32 %v2168_v18, 0.0  ;;  %v1926_v17 = vadd.f32 %v1925_v43, %v4561_v57 }
 0x539   : > { %2227 = vst [vmem:[%s4546_s19 + $0x90] sm:$0xff] %v2197_v32  ;;  %v2173_v16 = vmul.f32 %v2122_v35, %v1924_v7  ;;  %v4588_v35 = vrot.slane %v4531_v26, %v4865_v9 }
 0x53a   : > { %2228 = vst [vmem:[%s4546_s19 + $0x98] sm:$0xff] %v2198_v59  ;;  %v2174_v28 = vmul.f32 %v2126_v30, %v1926_v17 }
 0x53b   : > { %v2203_v42 = vmax.f32 %v2173_v16, 0.0  ;;  %v1994_v55 = vpop.f32.mrb[26].mxu1 }
 0x53c   : > { %v2204_v1 = vmax.f32 %v2174_v28, 0.0  ;;  %v1995_v3 = vadd.f32 %v1994_v55, %v4535_v47  ;;  %v1996_v46 = vpop.f32.mrb[27].mxu1 }
 0x53d   : > { %2233 = vst [vmem:[%s4546_s19 + $0xc0] sm:$0xff] %v2203_v42  ;;  %v1997_v63 = vadd.f32 %v1996_v46, %v4535_v47 }
 0x53e   : > { %2234 = vst [vmem:[%s4546_s19 + $0xc8] sm:$0xff] %v2204_v1  ;;  %v2151_v6 = vmul.f32 %v4570_v14, %v1995_v3 }
 0x53f   : > { %v2152_v54 = vmul.f32 %v4574_v13, %v1997_v63  ;;  %v2000_v36 = vpop.f32.mrb[28].mxu1  ;;  %v2089_v41 = vpop.f32.mrb[32].mxu0 }
 0x540   : > { %v2181_v49 = vmax.f32 %v2151_v6, 0.0  ;;  %v2001_v62 = vadd.f32 %v2000_v36, %v4542_v29  ;;  %v2090_v30 = vadd.f32 %v2089_v41, %v4535_v47  ;;  %v2002_v12 = vpop.f32.mrb[29].mxu1  ;;  %v2091_v8 = vpop.f32.mrb[33].mxu0 }
 0x541   : > { %v2182_v38 = vmax.f32 %v2152_v54, 0.0  ;;  %v2003_v61 = vadd.f32 %v2002_v12, %v4542_v29  ;;  %v2092_v39 = vadd.f32 %v2091_v8, %v4535_v47 }
 0x542   : > { %2211 = vst [vmem:[%s4546_s19 + $0x10] sm:$0xff] %v2181_v49  ;;  %v2157_v44 = vmul.f32 %v4570_v14, %v2001_v62  ;;  %v2153_v37 = vmul.f32 %v4583_v50, %v2090_v30 }
 0x543   : > { %2212 = vst [vmem:[%s4546_s19 + $0x18] sm:$0xff] %v2182_v38  ;;  %v2158_v26 = vmul.f32 %v4574_v13, %v2003_v61  ;;  %v2154_v33 = vmul.f32 %v4588_v35, %v2092_v39  ;;  %v2006_v4 = vpop.f32.mrb[30].mxu1  ;;  %v2095_v31 = vpop.f32.mrb[34].mxu0 }
 0x544   : > { %v2187_v56 = vmax.f32 %v2157_v44, 0.0  ;;  %v2183_v11 = vmax.f32 %v2153_v37, 0.0  ;;  %v2007_v47 = vadd.f32 %v2006_v4, %v4549_v0  ;;  %v2096_v15 = vadd.f32 %v2095_v31, %v4542_v29  ;;  %v2008_v40 = vpop.f32.mrb[31].mxu1  ;;  %v2097_v20 = vpop.f32.mrb[35].mxu0 }
 0x545   : > { %v2188_v52 = vmax.f32 %v2158_v26, 0.0  ;;  %v2184_v23 = vmax.f32 %v2154_v33, 0.0  ;;  %v2009_v51 = vadd.f32 %v2008_v40, %v4549_v0  ;;  %v2098_v19 = vadd.f32 %v2097_v20, %v4542_v29 }
 0x546   : > { %2217 = vst [vmem:[%s4546_s19 + $0x40] sm:$0xff] %v2187_v56  ;;  %2213 = vst [vmem:[%s4546_s19 + $0x20] sm:$0xff] %v2183_v11  ;;  %v2163_v34 = vmul.f32 %v4570_v14, %v2007_v47  ;;  %v2159_v25 = vmul.f32 %v4583_v50, %v2096_v15 }
 0x547   : > { %2218 = vst [vmem:[%s4546_s19 + $0x48] sm:$0xff] %v2188_v52  ;;  %2214 = vst [vmem:[%s4546_s19 + $0x28] sm:$0xff] %v2184_v23  ;;  %v2164_v45 = vmul.f32 %v4574_v13, %v2009_v51  ;;  %v2160_v60 = vmul.f32 %v4588_v35, %v2098_v19  ;;  %v2012_v10 = vpop.f32.mrb[32].mxu1  ;;  %v2101_v58 = vpop.f32.mrb[36].mxu0 }
 0x548   : > { %v2193_v22 = vmax.f32 %v2163_v34, 0.0  ;;  %v2189_v29 = vmax.f32 %v2159_v25, 0.0  ;;  %v2013_v5 = vadd.f32 %v2012_v10, %v4555_v21  ;;  %v2102_v2 = vadd.f32 %v2101_v58, %v4549_v0  ;;  %v2014_v18 = vpop.f32.mrb[33].mxu1  ;;  %v2103_v24 = vpop.f32.mrb[37].mxu0 }
 0x549   : > { %v2194_v32 = vmax.f32 %v2164_v45, 0.0  ;;  %v2190_v7 = vmax.f32 %v2160_v60, 0.0  ;;  %v2015_v43 = vadd.f32 %v2014_v18, %v4555_v21  ;;  %v2104_v59 = vadd.f32 %v2103_v24, %v4549_v0 }
 0x54a   : > { %2223 = vst [vmem:[%s4546_s19 + $0x70] sm:$0xff] %v2193_v22  ;;  %2219 = vst [vmem:[%s4546_s19 + $0x50] sm:$0xff] %v2189_v29  ;;  %v2169_v17 = vmul.f32 %v4570_v14, %v2013_v5  ;;  %v2165_v16 = vmul.f32 %v4583_v50, %v2102_v2 }
 0x54b   : > { %2224 = vst [vmem:[%s4546_s19 + $0x78] sm:$0xff] %v2194_v32  ;;  %2220 = vst [vmem:[%s4546_s19 + $0x58] sm:$0xff] %v2190_v7  ;;  %v2170_v28 = vmul.f32 %v4574_v13, %v2015_v43  ;;  %v2166_v27 = vmul.f32 %v4588_v35, %v2104_v59  ;;  %v2018_v42 = vpop.f32.mrb[34].mxu1  ;;  %v2107_v55 = vpop.f32.mrb[38].mxu0 }
 0x54c   : > { %v2199_v48 = vmax.f32 %v2169_v17, 0.0  ;;  %v2195_v0 = vmax.f32 %v2165_v16, 0.0  ;;  %v2019_v1 = vadd.f32 %v2018_v42, %v4561_v57  ;;  %v2108_v3 = vadd.f32 %v2107_v55, %v4555_v21  ;;  %v2020_v46 = vpop.f32.mrb[35].mxu1  ;;  %v2109_v63 = vpop.f32.mrb[39].mxu0 }
 0x54d   : > { %v2200_v6 = vmax.f32 %v2170_v28, 0.0  ;;  %v2196_v53 = vmax.f32 %v2166_v27, 0.0  ;;  %v2021_v54 = vadd.f32 %v2020_v46, %v4561_v57  ;;  %v2110_v36 = vadd.f32 %v2109_v63, %v4555_v21 }
 0x54e   : > { %2229 = vst [vmem:[%s4546_s19 + $0xa0] sm:$0xff] %v2199_v48  ;;  %2225 = vst [vmem:[%s4546_s19 + $0x80] sm:$0xff] %v2195_v0  ;;  %v2175_v41 = vmul.f32 %v4570_v14, %v2019_v1  ;;  %v2171_v9 = vmul.f32 %v4583_v50, %v2108_v3 }
 0x54f   : > { %2230 = vst [vmem:[%s4546_s19 + $0xa8] sm:$0xff] %v2200_v6  ;;  %2226 = vst [vmem:[%s4546_s19 + $0x88] sm:$0xff] %v2196_v53  ;;  %v2176_v49 = vmul.f32 %v4574_v13, %v2021_v54  ;;  %v2172_v62 = vmul.f32 %v4588_v35, %v2110_v36  ;;  %v2113_v30 = vpop.f32.mrb[40].mxu0 }
 0x550   : > { %v2205_v12 = vmax.f32 %v2175_v41, 0.0  ;;  %v2201_v21 = vmax.f32 %v2171_v9, 0.0  ;;  %v2114_v8 = vadd.f32 %v2113_v30, %v4561_v57  ;;  %v2115_v38 = vpop.f32.mrb[41].mxu0 }
 0x551   : > { %v2206_v14 = vmax.f32 %v2176_v49, 0.0  ;;  %v2202_v61 = vmax.f32 %v2172_v62, 0.0  ;;  %v2116_v39 = vadd.f32 %v2115_v38, %v4561_v57 }
 0x552   : > { %2235 = vst [vmem:[%s4546_s19 + $0xd0] sm:$0xff] %v2205_v12  ;;  %2231 = vst [vmem:[%s4546_s19 + $0xb0] sm:$0xff] %v2201_v21  ;;  %v2177_v13 = vmul.f32 %v4583_v50, %v2114_v8 }
 0x553   : > { %2236 = vst [vmem:[%s4546_s19 + $0xd8] sm:$0xff] %v2206_v14  ;;  %2232 = vst [vmem:[%s4546_s19 + $0xb8] sm:$0xff] %v2202_v61  ;;  %v2178_v44 = vmul.f32 %v4588_v35, %v2116_v39 }
 0x554   : > { %v2207_v37 = vmax.f32 %v2177_v13, 0.0 }
 0x555   : > { %v2208_v57 = vmax.f32 %v2178_v44, 0.0 }
 0x556   : > { %2237 = vst [vmem:[%s4546_s19 + $0xe0] sm:$0xff] %v2207_v37 }
 0x557   : > { %2238 = vst [vmem:[%s4546_s19 + $0xe8] sm:$0xff] %v2208_v57 }
 0x558   : > { %2783 = shalt.err (!%p2780_p10)
}
 0x559   : > { %s2784_s14 = scalar_lea.hbm %s4649_s1, 3840  ;;  %s2788_s24 = scalar_lea.hbm %s4867_s21, 7680 }
 0x55a   : > { %p2785_p4 = scmp.ne.s32.totalorder %s4649_s1, %s2784_s14  ;;  %p2789_p5 = scmp.lt.u32.totalorder %s4649_s1, %s4867_s21 }
 0x55b   : > { %p2790_p1 = scmp.lt.u32.totalorder %s2788_s24, %s2784_s14  ;;  %p2792_p2 = scmp.lt.u32.totalorder %s2784_s14, %s4649_s1 }
 0x55c   : > { %p2786_p12 = pnand %p2785_p4, %p4868_p7 }
 0x55d   : > { %p2791_p13 = por %p2790_p1, %p2789_p5 }
 0x55e   : > { %p2787_p3 = pneg %p2786_p12 }
 0x55f   : > { %p2793_p9 = por %p2792_p2, %p2791_p13 }
 0x561   : > { %p2794_p0 = pnand %p2793_p9, %p2787_p3 }
 0x563   : > { %2797 = shalt.err (!%p2794_p0)
}
 0x564   : > { %s2852_s19 = smov 768   ;;  %s2853_s17 = smov 48  }
 0x565   : > { %2620 = dma.vmem_to_hbm [thread:$0]  (%p4868_p7), %s4651_s29, 3840, %s4649_s1, %s2240_s25, %s2852_s19, %s2852_s19, %s2853_s17  }
 0x566 PF: > { %s4869_s27 = sld [smem:[#allocation12_spill]]  ;;  %s4870_s12 = sld [smem:[#allocation17_spill]] }
 0x567   : > { %p4872_p11 = scmp.ge.s32.totalorder %s2840_s20, 2 }
 0x56c   : > { %s2268_s26 = sand.u32 1, %s4869_s27   ;;  %p4871_p6 = scmp.ne.s32.totalorder %s4870_s12, 0 }
 0x56d   : > { %s2269_s22 = scalar_lea.sflag [#allocation4], %s2268_s26 }
 0x56e   : > { %p2633_p8 = pnand %p4872_p11, %p4871_p6 }
 0x570   : > { %2823 = dma.done.wait (!%p2633_p8), %s2269_s22, 3840  }
 0x571   : > { %2825 = vsyncadd (!%p2633_p8), %s2269_s22, 4294963456  ;;  %s4873_s20 = sld [smem:[#allocation14_spill]]  ;;  %s4874_s13 = sld [smem:[#allocation13_spill]] }
 0x572   : > { %s4875_s19 = sld [smem:[#allocation15_spill]]  ;;  %s4876_s17 = smov %s2832_s18 }
 0x577   : > { %p27_p10 = scmp.ge.s32.totalorder %s4873_s20, 4   ;;  %s4877_s18 = smov %s4874_s13 }
 0x579   :  { %29 = sbr.rel (!%p27_p10) target bundleno = 11 (0xb), region = 133 }
 0x580   :  { %2274 = vsyncpa [#allocation3], 1 }
 0x581   :  { %2276 = vsyncpa [#allocation3 + $0x1], 1 }
 0x582   :  { %2277 = vsyncpa [#allocation6], 1 }
 0x583   :  { %2279 = vsyncpa [#allocation6 + $0x1], 1 }
 0x584   :  { %2280 = vsyncpa [#allocation4], 1 }
 0x585   :  { %2282 = vsyncpa [#allocation4 + $0x1], 1 }

</bundles_post_ra>
